<compile_context>
chip_gen: v6e
topology: v6e:2x2x1
jax: 0.10.0
libtpu: 0.0.40
codegen_flags: <defaults>
</compile_context>

<pallas_src>
import jax
import jax.numpy as jnp
from jax.experimental import pallas as pl
from jax.experimental.pallas import tpu as pltpu

EMBED_DIM = 32
LAYER_NUM = 3
N_NODES = 16
N_EDGES = 32
N_GRAPHS = 2
RBF_K = 16

ATOM_VOCAB = {"atomic_num": 16, "chiral_tag": 4}
BOND_VOCAB = {"bond_dir": 5, "bond_type": 6}
BOND_FLOAT_NAMES = ("bond_length",)

# ---- packed parameter slab layout (width = EMBED_DIM) ----
R_ATOMIC, N_ATOMIC = 0, 16
R_CHIRAL, N_CHIRAL = 16, 4
R_BDIR, N_BDIR = 20, 5
R_BTYPE, N_BTYPE = 25, 6
R_RBF_B = 31
R_RBF_W = 32                       # EMBED_DIM rows (first RBF_K real, rest zero)
R_CENTERS = 64
R_GAMMA = 65
P32_HEADER = 72                    # header padded to a multiple of 8 rows
P32_LAYER_STRIDE = 72              # w2(64) | b2 | ln_gamma | ln_beta | (1+eps) | pad(4)
P32_ROWS = P32_HEADER + LAYER_NUM * P32_LAYER_STRIDE      # 288

P64_LAYER_STRIDE = 40              # w1(32) | b1 | pad(7)
P64_ROWS = LAYER_NUM * P64_LAYER_STRIDE                   # 120

# ---- graph slab layout (width = EMBED_DIM) ----
GS_COL_ROWS = max(N_NODES, N_EDGES)          # rows 0..31: column-oriented fields
C_ATOMIC, C_CHIRAL, C_BDIR, C_BTYPE, C_SRC, C_BLEN, C_BATCH = 0, 1, 2, 3, 4, 5, 6
ROW_DST = GS_COL_ROWS                        # row 32: dst laid along lanes
ROW_BATCH = GS_COL_ROWS + 1                  # row 33: batch laid along lanes
GS_ROWS = GS_COL_ROWS + 2                    # 34

_VMEM = pl.BlockSpec(memory_space=pltpu.MemorySpace.VMEM)


# ----------------------------- Pallas kernel -----------------------------

def _ginnet_fused_kernel(g_ref, p32_ref, p64_ref, out_ref):
    """Embeddings + RBF + graph aggregation + all GIN blocks + mean pool, fused."""
    f32, bf16 = jnp.float32, jnp.bfloat16
    N, E, G, D = N_NODES, N_EDGES, N_GRAPHS, EMBED_DIM

    def onehot(col, num):
        # col: [rows, 1] f32 holding exact small integers -> [rows, num] f32 one-hot.
        iota = jax.lax.broadcasted_iota(jnp.int32, (col.shape[0], num), 1).astype(f32)
        return (col == iota).astype(f32)

    # ---- node / edge embeddings as lookup-by-matmul (exact) ----
    x = jnp.dot(onehot(g_ref[0:N, C_ATOMIC:C_ATOMIC + 1], N_ATOMIC),
                p32_ref[R_ATOMIC:R_ATOMIC + N_ATOMIC, :], preferred_element_type=f32)
    x = x + jnp.dot(onehot(g_ref[0:N, C_CHIRAL:C_CHIRAL + 1], N_CHIRAL),
                    p32_ref[R_CHIRAL:R_CHIRAL + N_CHIRAL, :], preferred_element_type=f32)

    eh = jnp.dot(onehot(g_ref[0:E, C_BDIR:C_BDIR + 1], N_BDIR),
                 p32_ref[R_BDIR:R_BDIR + N_BDIR, :], preferred_element_type=f32)
    eh = eh + jnp.dot(onehot(g_ref[0:E, C_BTYPE:C_BTYPE + 1], N_BTYPE),
                      p32_ref[R_BTYPE:R_BTYPE + N_BTYPE, :], preferred_element_type=f32)

    # BondFloatRBF: exp(-gamma*(len - centers)^2) @ W + b   (centers/W zero-padded to D,
    # so the padded lanes contribute exactly 0 through the zero rows of W).
    blen = g_ref[0:E, C_BLEN:C_BLEN + 1]                       # [E, 1]
    centers = p32_ref[R_CENTERS:R_CENTERS + 1, :]              # [1, D]
    gamma = p32_ref[R_GAMMA:R_GAMMA + 1, :]                    # [1, D]
    rbf = jnp.exp(-gamma * (blen - centers) ** 2)              # [E, D]
    eh = (eh + jnp.dot(rbf, p32_ref[R_RBF_W:R_RBF_W + D, :], preferred_element_type=f32)
          + p32_ref[R_RBF_B:R_RBF_B + 1, :])                   # [E, D] edge_hidden

    # ---- graph structure as one-hot incidence matmuls (replaces XLA scatter/gather) ----
    s_oh = onehot(g_ref[0:E, C_SRC:C_SRC + 1], N)                              # [E, N]
    dst_row = g_ref[ROW_DST:ROW_DST + 1, 0:E]                                  # [1, E]
    d_oh_t = (dst_row ==
              jax.lax.broadcasted_iota(jnp.int32, (N, E), 0).astype(f32)).astype(f32)  # [N, E]
    adj = jnp.dot(d_oh_t, s_oh, preferred_element_type=f32)    # adj[n,m] = #edges m->n
    agg_e = jnp.dot(d_oh_t, eh, preferred_element_type=f32)    # scatter_sum(edge_hidden, dst)

    # GraphNorm scale (1/sqrt(#nodes per graph)) and mean-pool matrix from batch ids.
    batch_row = g_ref[ROW_BATCH:ROW_BATCH + 1, 0:N]                            # [1, N]
    p_t = (batch_row ==
           jax.lax.broadcasted_iota(jnp.int32, (G, N), 0).astype(f32)).astype(f32)     # [G, N]
    p_n = onehot(g_ref[0:N, C_BATCH:C_BATCH + 1], G)                           # [N, G]
    counts_col = jnp.sum(p_t, axis=1, keepdims=True)                           # [G, 1]
    counts_row = jnp.sum(p_n, axis=0, keepdims=True)                           # [1, G]
    gnorm = jnp.sum(p_n * jax.lax.rsqrt(counts_row), axis=1, keepdims=True)    # [N, 1]
    pool = p_t * (1.0 / counts_col)                                            # [G, N]

    # ---- LAYER_NUM x (GIN conv + MLP + LayerNorm + GraphNorm + residual), unrolled ----
    adj_b = adj.astype(bf16)     # bf16 MXU operands, f32 accumulation & elementwise math
    for layer in range(LAYER_NUM):
        b32 = P32_HEADER + P32_LAYER_STRIDE * layer
        b64 = P64_LAYER_STRIDE * layer
        w1 = p64_ref[b64:b64 + D, :].astype(bf16)                              # [D, 2D]
        b1 = p64_ref[b64 + D:b64 + D + 1, :]                                   # [1, 2D]
        w2 = p32_ref[b32:b32 + 2 * D, :].astype(bf16)                          # [2D, D]
        b2 = p32_ref[b32 + 2 * D:b32 + 2 * D + 1, :]                           # [1, D]
        ln_g = p32_ref[b32 + 2 * D + 1:b32 + 2 * D + 2, :]
        ln_b = p32_ref[b32 + 2 * D + 2:b32 + 2 * D + 3, :]
        one_eps = p32_ref[b32 + 2 * D + 3:b32 + 2 * D + 4, :]                  # row of (1+eps_l)

        # GIN conv: h = adj @ x + scatter_sum(edge_hidden, dst) + (1+eps) * x
        h = jnp.dot(adj_b, x.astype(bf16), preferred_element_type=f32) + agg_e + one_eps * x
        # MLP: Linear(D, 2D) -> ReLU -> Linear(2D, D)
        h1 = jnp.maximum(jnp.dot(h.astype(bf16), w1, preferred_element_type=f32) + b1, 0.0)
        h2 = jnp.dot(h1.astype(bf16), w2, preferred_element_type=f32) + b2
        # LayerNorm over the feature axis (f32)
        mu = jnp.mean(h2, axis=-1, keepdims=True)
        var = jnp.mean((h2 - mu) ** 2, axis=-1, keepdims=True)
        hn = (h2 - mu) * jax.lax.rsqrt(var + 1e-5) * ln_g + ln_b
        # GraphNorm
        hn = hn * gnorm
        if layer < LAYER_NUM - 1:            # last block has last_act=False
            hn = jnp.maximum(hn, 0.0)
        x = hn + x                           # dropout == identity in eval; residual

    # scatter_mean readout
    out_ref[...] = jnp.dot(pool, x, preferred_element_type=f32)


# ----------------------------- params & packing -----------------------------

def init_params(key):
    k_atom, k_bond, k_rbf, k_blk1, k_blk2 = jax.random.split(key, 5)
    params = {}
    atom_keys = jax.random.split(k_atom, len(ATOM_VOCAB))
    params["atom_emb"] = {name: 0.1 * jax.random.normal(k, (v, EMBED_DIM), jnp.float32)
                          for k, (name, v) in zip(atom_keys, ATOM_VOCAB.items())}
    bond_keys = jax.random.split(k_bond, len(BOND_VOCAB))
    params["bond_emb"] = {name: 0.1 * jax.random.normal(k, (v, EMBED_DIM), jnp.float32)
                          for k, (name, v) in zip(bond_keys, BOND_VOCAB.items())}
    params["rbf"] = {}
    rbf_keys = jax.random.split(k_rbf, len(BOND_FLOAT_NAMES))
    for k, name in zip(rbf_keys, BOND_FLOAT_NAMES):
        params["rbf"][name] = {
            "centers": jnp.linspace(0.0, 2.0, RBF_K, dtype=jnp.float32),
            "gamma": jnp.float32(10.0),
            "w": 0.1 * jax.random.normal(k, (RBF_K, EMBED_DIM), jnp.float32),
            "b": jnp.zeros((EMBED_DIM,), jnp.float32),
        }
    params["blocks"] = {
        "w1": (1.0 / jnp.sqrt(EMBED_DIM)) *
              jax.random.normal(k_blk1, (LAYER_NUM, EMBED_DIM, 2 * EMBED_DIM), jnp.float32),
        "b1": jnp.zeros((LAYER_NUM, 1, 2 * EMBED_DIM), jnp.float32),
        "w2": (1.0 / jnp.sqrt(2 * EMBED_DIM)) *
              jax.random.normal(k_blk2, (LAYER_NUM, 2 * EMBED_DIM, EMBED_DIM), jnp.float32),
        "b2": jnp.zeros((LAYER_NUM, 1, EMBED_DIM), jnp.float32),
        "gamma": jnp.ones((LAYER_NUM, 1, EMBED_DIM), jnp.float32),   # LayerNorm weight
        "beta": jnp.zeros((LAYER_NUM, 1, EMBED_DIM), jnp.float32),   # LayerNorm bias
        "eps": jnp.full((LAYER_NUM,), 0.1, jnp.float32),             # GIN eps per layer
    }
    return params


def pack_params(params):
    """Done ONCE at init: pack every parameter into two VMEM-friendly slabs."""
    D = EMBED_DIM
    blk = params["blocks"]
    rbf = params["rbf"]["bond_length"]
    pieces32 = [
        params["atom_emb"]["atomic_num"],                                   # rows 0..15
        params["atom_emb"]["chiral_tag"],                                   # 16..19
        params["bond_emb"]["bond_dir"],                                     # 20..24
        params["bond_emb"]["bond_type"],                                    # 25..30
        rbf["b"][None, :],                                                  # 31
        jnp.concatenate([rbf["w"], jnp.zeros((D - RBF_K, D), jnp.float32)], 0),  # 32..63
        jnp.pad(rbf["centers"], (0, D - RBF_K))[None, :],                   # 64
        rbf["gamma"] * jnp.ones((1, D), jnp.float32),                       # 65
        jnp.zeros((P32_HEADER - 66, D), jnp.float32),                       # pad to 72
    ]
    for l in range(LAYER_NUM):
        pieces32 += [
            blk["w2"][l],                                                   # 64 rows
            blk["b2"][l], blk["gamma"][l], blk["beta"][l],                  # 3 rows
            (1.0 + blk["eps"][l]) * jnp.ones((1, D), jnp.float32),          # 1 row
            jnp.zeros((P32_LAYER_STRIDE - 68, D), jnp.float32),             # pad to 72
        ]
    p32 = jnp.concatenate(pieces32, axis=0)
    assert p32.shape == (P32_ROWS, D)

    pieces64 = []
    for l in range(LAYER_NUM):
        pieces64 += [blk["w1"][l], blk["b1"][l],
                     jnp.zeros((P64_LAYER_STRIDE - D - 1, 2 * D), jnp.float32)]
    p64 = jnp.concatenate(pieces64, axis=0)
    assert p64.shape == (P64_ROWS, 2 * D)
    return p32, p64


def _pack_graph(graph):
    """Per-forward: pack all graph data into one [34, 32] f32 slab (a few fused ops)."""
    f32 = jnp.float32
    src, dst = graph["edge_index"][0], graph["edge_index"][1]

    def pad_n(a):    # pad node-length arrays (N) to the E-row column region
        return jnp.pad(a.astype(f32), (0, GS_COL_ROWS - a.shape[0]))

    cols = jnp.stack([
        pad_n(graph["atomic_num"]), pad_n(graph["chiral_tag"]),
        graph["bond_dir"].astype(f32), graph["bond_type"].astype(f32),
        src.astype(f32), graph["bond_length"].astype(f32),
        pad_n(graph["batch"]), jnp.zeros((GS_COL_ROWS,), f32),
    ], axis=1)                                                  # [32, 8] column fields
    cols = jnp.pad(cols, ((0, 0), (0, EMBED_DIM - cols.shape[1])))   # [32, 32]
    rows = jnp.stack([dst.astype(f32), pad_n(graph["batch"])], axis=0)   # [2, 32] row fields
    return jnp.concatenate([cols, rows], axis=0)                # [34, 32]


@jax.jit
def ginnet_forward(p32, p64, graph):
    gslab = _pack_graph(graph)
    return pl.pallas_call(
        _ginnet_fused_kernel,
        out_shape=jax.ShapeDtypeStruct((N_GRAPHS, EMBED_DIM), jnp.float32),
        in_specs=[_VMEM, _VMEM, _VMEM],
        out_specs=_VMEM,
    )(gslab, p32, p64)


# ----------------------------- pure-JAX reference -----------------------------

def ginnet_reference(params, graph):
    """Direct f32 implementation following the PyTorch module."""
    edge_index = graph["edge_index"]
    batch = graph["batch"]
    src, dst = edge_index[0], edge_index[1]
    node_hidden = sum(jnp.take(params["atom_emb"][n], graph[n], axis=0) for n in ATOM_VOCAB)
    bond_embed = sum(jnp.take(params["bond_emb"][n], graph[n], axis=0) for n in BOND_VOCAB)
    rbf_out = 0.0
    for name in BOND_FLOAT_NAMES:
        p = params["rbf"][name]
        xv = graph[name][:, None]
        rbf = jnp.exp(-p["gamma"] * (xv - p["centers"][None, :]) ** 2)
        rbf_out = rbf_out + rbf @ p["w"] + p["b"]
    edge_hidden = bond_embed + rbf_out
    counts = jax.ops.segment_sum(jnp.ones((N_NODES,), jnp.float32), batch, N_GRAPHS)
    gnorm = (1.0 / jnp.sqrt(counts))[batch][:, None]
    blk = params["blocks"]
    x = node_hidden
    for l in range(LAYER_NUM):
        edge_attr = edge_hidden + x[src]
        agg = jax.ops.segment_sum(edge_attr, dst, num_segments=N_NODES)
        h = agg + (1.0 + blk["eps"][l]) * x
        h1 = jnp.maximum(h @ blk["w1"][l] + blk["b1"][l], 0.0)
        h2 = h1 @ blk["w2"][l] + blk["b2"][l]
        mu = h2.mean(-1, keepdims=True)
        var = ((h2 - mu) ** 2).mean(-1, keepdims=True)
        hn = (h2 - mu) * jax.lax.rsqrt(var + 1e-5) * blk["gamma"][l] + blk["beta"][l]
        hn = hn * gnorm
        if l < LAYER_NUM - 1:
            hn = jnp.maximum(hn, 0.0)
        x = hn + x
    return jax.ops.segment_sum(x, batch, N_GRAPHS) / counts[:, None]


# ----------------------------- main -----------------------------

if __name__ == "__main__":
    key = jax.random.PRNGKey(0)
    pkey, gkey = jax.random.split(key)
    params = init_params(pkey)
    p32, p64 = pack_params(params)          # packed once, reused every forward

    k1, k2, k3, k4, k5, k6, k7, k8, k9 = jax.random.split(gkey, 9)
    batch = jnp.concatenate([jnp.zeros((N_NODES // 2,), jnp.int32),
                             jnp.ones((N_NODES - N_NODES // 2,), jnp.int32)])
    # edges stay within each graph
    src0 = jax.random.randint(k1, (N_EDGES // 2,), 0, N_NODES // 2)
    dst0 = jax.random.randint(k2, (N_EDGES // 2,), 0, N_NODES // 2)
    src1 = jax.random.randint(k3, (N_EDGES // 2,), N_NODES // 2, N_NODES)
    dst1 = jax.random.randint(k4, (N_EDGES // 2,), N_NODES // 2, N_NODES)
    edge_index = jnp.stack([jnp.concatenate([src0, src1]),
                            jnp.concatenate([dst0, dst1])]).astype(jnp.int32)

    graph = {
        "atomic_num": jax.random.randint(k5, (N_NODES,), 0, ATOM_VOCAB["atomic_num"]),
        "chiral_tag": jax.random.randint(k6, (N_NODES,), 0, ATOM_VOCAB["chiral_tag"]),
        "bond_dir": jax.random.randint(k7, (N_EDGES,), 0, BOND_VOCAB["bond_dir"]),
        "bond_type": jax.random.randint(k8, (N_EDGES,), 0, BOND_VOCAB["bond_type"]),
        "bond_length": jax.random.uniform(k9, (N_EDGES,), jnp.float32, 0.5, 2.0),
        "edge_index": edge_index,
        "batch": batch,
    }

    out = jax.block_until_ready(ginnet_forward(p32, p64, graph))
    ref = jax.block_until_ready(ginnet_reference(params, graph))

    assert out.shape == (N_GRAPHS, EMBED_DIM)
    assert bool(jnp.all(jnp.isfinite(out)))
    # Kernel uses bf16 MXU operands (f32 accumulate) on the 3-layer dot chain, so the
    # tolerance vs. the pure-f32 reference is relaxed accordingly.
    max_err = float(jnp.max(jnp.abs(out - ref)))
    assert bool(jnp.allclose(out, ref, atol=3e-2, rtol=3e-2)), f"max abs err {max_err}"
    print("KERNEL_OK")
</pallas_src>

<mosaic_0001>
module attributes {stable_mosaic.version = 11 : i64} {
  func.func @_ginnet_fused_kernel(%arg0: memref<34x32xf32, #tpu.memory_space<vmem>>, %arg1: memref<288x32xf32, #tpu.memory_space<vmem>>, %arg2: memref<120x64xf32, #tpu.memory_space<vmem>>, %arg3: memref<2x32xf32, #tpu.memory_space<vmem>>) attributes {dimension_semantics = [], scalar_prefetch = 0 : i64, scratch_operands = 0 : i64, tpu.core_type = #tpu.core_type<tc>} {
    %c0 = arith.constant 0 : index
    %c0_0 = arith.constant 0 : index
    %0 = vector.load %arg0[%c0, %c0_0] : memref<34x32xf32, #tpu.memory_space<vmem>>, vector<16x1xf32>
    %1 = tpu.iota {dimensions = array<i32: 1>} : vector<16x16xi32>
    %2 = arith.sitofp %1 : vector<16x16xi32> to vector<16x16xf32>
    %3 = vector.broadcast %0 : vector<16x1xf32> to vector<16x16xf32>
    %4 = arith.cmpf oeq, %3, %2 : vector<16x16xf32>
    %5 = arith.extui %4 : vector<16x16xi1> to vector<16x16xi32>
    %6 = arith.sitofp %5 : vector<16x16xi32> to vector<16x16xf32>
    %c0_1 = arith.constant 0 : index
    %c0_2 = arith.constant 0 : index
    %7 = vector.load %arg1[%c0_1, %c0_2] : memref<288x32xf32, #tpu.memory_space<vmem>>, vector<16x32xf32>
    %cst = arith.constant dense<0.000000e+00> : vector<16x32xf32>
    %8 = tpu.matmul %6, %7, %cst {dimension_numbers = #tpu.dot_dimension_numbers<[1], [0], [0], [1], [0, 0, 1, 1], [], []>} : vector<16x16xf32>, vector<16x32xf32>, vector<16x32xf32> -> vector<16x32xf32>
    %c0_3 = arith.constant 0 : index
    %c1 = arith.constant 1 : index
    %9 = vector.load %arg0[%c0_3, %c1] : memref<34x32xf32, #tpu.memory_space<vmem>>, vector<16x1xf32>
    %10 = tpu.iota {dimensions = array<i32: 1>} : vector<16x4xi32>
    %11 = arith.sitofp %10 : vector<16x4xi32> to vector<16x4xf32>
    %12 = vector.broadcast %9 : vector<16x1xf32> to vector<16x4xf32>
    %13 = arith.cmpf oeq, %12, %11 : vector<16x4xf32>
    %14 = arith.extui %13 : vector<16x4xi1> to vector<16x4xi32>
    %15 = arith.sitofp %14 : vector<16x4xi32> to vector<16x4xf32>
    %c16 = arith.constant 16 : index
    %c0_4 = arith.constant 0 : index
    %16 = vector.load %arg1[%c16, %c0_4] : memref<288x32xf32, #tpu.memory_space<vmem>>, vector<4x32xf32>
    %cst_5 = arith.constant dense<0.000000e+00> : vector<16x32xf32>
    %17 = tpu.matmul %15, %16, %cst_5 {dimension_numbers = #tpu.dot_dimension_numbers<[1], [0], [0], [1], [0, 0, 1, 1], [], []>} : vector<16x4xf32>, vector<4x32xf32>, vector<16x32xf32> -> vector<16x32xf32>
    %18 = arith.addf %8, %17 : vector<16x32xf32>
    %c0_6 = arith.constant 0 : index
    %c2 = arith.constant 2 : index
    %19 = vector.load %arg0[%c0_6, %c2] : memref<34x32xf32, #tpu.memory_space<vmem>>, vector<32x1xf32>
    %20 = tpu.iota {dimensions = array<i32: 1>} : vector<32x5xi32>
    %21 = arith.sitofp %20 : vector<32x5xi32> to vector<32x5xf32>
    %22 = vector.broadcast %19 : vector<32x1xf32> to vector<32x5xf32>
    %23 = arith.cmpf oeq, %22, %21 : vector<32x5xf32>
    %24 = arith.extui %23 : vector<32x5xi1> to vector<32x5xi32>
    %25 = arith.sitofp %24 : vector<32x5xi32> to vector<32x5xf32>
    %c20 = arith.constant 20 : index
    %c0_7 = arith.constant 0 : index
    %26 = vector.load %arg1[%c20, %c0_7] : memref<288x32xf32, #tpu.memory_space<vmem>>, vector<5x32xf32>
    %cst_8 = arith.constant dense<0.000000e+00> : vector<32x32xf32>
    %27 = tpu.matmul %25, %26, %cst_8 {dimension_numbers = #tpu.dot_dimension_numbers<[1], [0], [0], [1], [0, 0, 1, 1], [], []>} : vector<32x5xf32>, vector<5x32xf32>, vector<32x32xf32> -> vector<32x32xf32>
    %c0_9 = arith.constant 0 : index
    %c3 = arith.constant 3 : index
    %28 = vector.load %arg0[%c0_9, %c3] : memref<34x32xf32, #tpu.memory_space<vmem>>, vector<32x1xf32>
    %29 = tpu.iota {dimensions = array<i32: 1>} : vector<32x6xi32>
    %30 = arith.sitofp %29 : vector<32x6xi32> to vector<32x6xf32>
    %31 = vector.broadcast %28 : vector<32x1xf32> to vector<32x6xf32>
    %32 = arith.cmpf oeq, %31, %30 : vector<32x6xf32>
    %33 = arith.extui %32 : vector<32x6xi1> to vector<32x6xi32>
    %34 = arith.sitofp %33 : vector<32x6xi32> to vector<32x6xf32>
    %c25 = arith.constant 25 : index
    %c0_10 = arith.constant 0 : index
    %35 = vector.load %arg1[%c25, %c0_10] : memref<288x32xf32, #tpu.memory_space<vmem>>, vector<6x32xf32>
    %cst_11 = arith.constant dense<0.000000e+00> : vector<32x32xf32>
    %36 = tpu.matmul %34, %35, %cst_11 {dimension_numbers = #tpu.dot_dimension_numbers<[1], [0], [0], [1], [0, 0, 1, 1], [], []>} : vector<32x6xf32>, vector<6x32xf32>, vector<32x32xf32> -> vector<32x32xf32>
    %37 = arith.addf %27, %36 : vector<32x32xf32>
    %c0_12 = arith.constant 0 : index
    %c5 = arith.constant 5 : index
    %38 = vector.load %arg0[%c0_12, %c5] : memref<34x32xf32, #tpu.memory_space<vmem>>, vector<32x1xf32>
    %c64 = arith.constant 64 : index
    %c0_13 = arith.constant 0 : index
    %39 = vector.load %arg1[%c64, %c0_13] : memref<288x32xf32, #tpu.memory_space<vmem>>, vector<1x32xf32>
    %c65 = arith.constant 65 : index
    %c0_14 = arith.constant 0 : index
    %40 = vector.load %arg1[%c65, %c0_14] : memref<288x32xf32, #tpu.memory_space<vmem>>, vector<1x32xf32>
    %cst_15 = arith.constant 0.000000e+00 : f32
    %41 = vector.broadcast %cst_15 : f32 to vector<1x32xf32>
    %42 = arith.subf %41, %40 : vector<1x32xf32>
    %43 = vector.broadcast %38 : vector<32x1xf32> to vector<32x32xf32>
    %44 = vector.broadcast %39 : vector<1x32xf32> to vector<32x32xf32>
    %45 = arith.subf %43, %44 : vector<32x32xf32>
    %46 = arith.mulf %45, %45 : vector<32x32xf32>
    %47 = vector.broadcast %42 : vector<1x32xf32> to vector<32x32xf32>
    %48 = arith.mulf %47, %46 : vector<32x32xf32>
    %49 = math.exp %48 : vector<32x32xf32>
    %c32 = arith.constant 32 : index
    %c0_16 = arith.constant 0 : index
    %50 = vector.load %arg1[%c32, %c0_16] : memref<288x32xf32, #tpu.memory_space<vmem>>, vector<32x32xf32>
    %cst_17 = arith.constant dense<0.000000e+00> : vector<32x32xf32>
    %51 = tpu.matmul %49, %50, %cst_17 {dimension_numbers = #tpu.dot_dimension_numbers<[1], [0], [0], [1], [0, 0, 1, 1], [], []>} : vector<32x32xf32>, vector<32x32xf32>, vector<32x32xf32> -> vector<32x32xf32>
    %52 = arith.addf %37, %51 : vector<32x32xf32>
    %c31 = arith.constant 31 : index
    %c0_18 = arith.constant 0 : index
    %53 = vector.load %arg1[%c31, %c0_18] : memref<288x32xf32, #tpu.memory_space<vmem>>, vector<1x32xf32>
    %54 = vector.broadcast %53 : vector<1x32xf32> to vector<32x32xf32>
    %55 = arith.addf %52, %54 : vector<32x32xf32>
    %c0_19 = arith.constant 0 : index
    %c4 = arith.constant 4 : index
    %56 = vector.load %arg0[%c0_19, %c4] : memref<34x32xf32, #tpu.memory_space<vmem>>, vector<32x1xf32>
    %57 = tpu.iota {dimensions = array<i32: 1>} : vector<32x16xi32>
    %58 = arith.sitofp %57 : vector<32x16xi32> to vector<32x16xf32>
    %59 = vector.broadcast %56 : vector<32x1xf32> to vector<32x16xf32>
    %60 = arith.cmpf oeq, %59, %58 : vector<32x16xf32>
    %61 = arith.extui %60 : vector<32x16xi1> to vector<32x16xi32>
    %62 = arith.sitofp %61 : vector<32x16xi32> to vector<32x16xf32>
    %c32_20 = arith.constant 32 : index
    %c0_21 = arith.constant 0 : index
    %63 = vector.load %arg0[%c32_20, %c0_21] : memref<34x32xf32, #tpu.memory_space<vmem>>, vector<1x32xf32>
    %64 = tpu.iota {dimensions = array<i32: 0>} : vector<16x32xi32>
    %65 = arith.sitofp %64 : vector<16x32xi32> to vector<16x32xf32>
    %66 = vector.broadcast %63 : vector<1x32xf32> to vector<16x32xf32>
    %67 = arith.cmpf oeq, %66, %65 : vector<16x32xf32>
    %68 = arith.extui %67 : vector<16x32xi1> to vector<16x32xi32>
    %69 = arith.sitofp %68 : vector<16x32xi32> to vector<16x32xf32>
    %cst_22 = arith.constant dense<0.000000e+00> : vector<16x16xf32>
    %70 = tpu.matmul %69, %62, %cst_22 {dimension_numbers = #tpu.dot_dimension_numbers<[1], [0], [0], [1], [0, 0, 1, 1], [], []>} : vector<16x32xf32>, vector<32x16xf32>, vector<16x16xf32> -> vector<16x16xf32>
    %cst_23 = arith.constant dense<0.000000e+00> : vector<16x32xf32>
    %71 = tpu.matmul %69, %55, %cst_23 {dimension_numbers = #tpu.dot_dimension_numbers<[1], [0], [0], [1], [0, 0, 1, 1], [], []>} : vector<16x32xf32>, vector<32x32xf32>, vector<16x32xf32> -> vector<16x32xf32>
    %c33 = arith.constant 33 : index
    %c0_24 = arith.constant 0 : index
    %72 = vector.load %arg0[%c33, %c0_24] : memref<34x32xf32, #tpu.memory_space<vmem>>, vector<1x16xf32>
    %73 = tpu.iota {dimensions = array<i32: 0>} : vector<2x16xi32>
    %74 = arith.sitofp %73 : vector<2x16xi32> to vector<2x16xf32>
    %75 = vector.broadcast %72 : vector<1x16xf32> to vector<2x16xf32>
    %76 = arith.cmpf oeq, %75, %74 : vector<2x16xf32>
    %77 = arith.extui %76 : vector<2x16xi1> to vector<2x16xi32>
    %78 = arith.sitofp %77 : vector<2x16xi32> to vector<2x16xf32>
    %c0_25 = arith.constant 0 : index
    %c6 = arith.constant 6 : index
    %79 = vector.load %arg0[%c0_25, %c6] : memref<34x32xf32, #tpu.memory_space<vmem>>, vector<16x1xf32>
    %80 = tpu.iota {dimensions = array<i32: 1>} : vector<16x2xi32>
    %81 = arith.sitofp %80 : vector<16x2xi32> to vector<16x2xf32>
    %82 = vector.broadcast %79 : vector<16x1xf32> to vector<16x2xf32>
    %83 = arith.cmpf oeq, %82, %81 : vector<16x2xf32>
    %84 = arith.extui %83 : vector<16x2xi1> to vector<16x2xi32>
    %85 = arith.sitofp %84 : vector<16x2xi32> to vector<16x2xf32>
    %cst_26 = arith.constant dense<0.000000e+00> : vector<2xf32>
    %86 = vector.multi_reduction <add>, %78, %cst_26 [1] : vector<2x16xf32> to vector<2xf32>
    %87 = vector.shape_cast %86 : vector<2xf32> to vector<2x1xf32>
    %cst_27 = arith.constant dense<0.000000e+00> : vector<2xf32>
    %88 = vector.multi_reduction <add>, %85, %cst_27 [0] : vector<16x2xf32> to vector<2xf32>
    %89 = vector.shape_cast %88 : vector<2xf32> to vector<1x2xf32>
    %90 = math.rsqrt %89 : vector<1x2xf32>
    %91 = vector.broadcast %90 : vector<1x2xf32> to vector<16x2xf32>
    %92 = arith.mulf %85, %91 : vector<16x2xf32>
    %cst_28 = arith.constant dense<0.000000e+00> : vector<16xf32>
    %93 = vector.multi_reduction <add>, %92, %cst_28 [1] : vector<16x2xf32> to vector<16xf32>
    %94 = vector.shape_cast %93 : vector<16xf32> to vector<16x1xf32>
    %cst_29 = arith.constant 1.000000e+00 : f32
    %95 = vector.broadcast %cst_29 : f32 to vector<2x1xf32>
    %96 = arith.divf %95, %87 : vector<2x1xf32>
    %97 = vector.broadcast %96 : vector<2x1xf32> to vector<2x16xf32>
    %98 = arith.mulf %78, %97 : vector<2x16xf32>
    %99 = arith.truncf %70 : vector<16x16xf32> to vector<16x16xbf16>
    %c0_30 = arith.constant 0 : index
    %c0_31 = arith.constant 0 : index
    %100 = vector.load %arg2[%c0_30, %c0_31] : memref<120x64xf32, #tpu.memory_space<vmem>>, vector<32x64xf32>
    %101 = arith.truncf %100 : vector<32x64xf32> to vector<32x64xbf16>
    %c32_32 = arith.constant 32 : index
    %c0_33 = arith.constant 0 : index
    %102 = vector.load %arg2[%c32_32, %c0_33] : memref<120x64xf32, #tpu.memory_space<vmem>>, vector<1x64xf32>
    %c72 = arith.constant 72 : index
    %c0_34 = arith.constant 0 : index
    %103 = vector.load %arg1[%c72, %c0_34] : memref<288x32xf32, #tpu.memory_space<vmem>>, vector<64x32xf32>
    %104 = arith.truncf %103 : vector<64x32xf32> to vector<64x32xbf16>
    %c136 = arith.constant 136 : index
    %c0_35 = arith.constant 0 : index
    %105 = vector.load %arg1[%c136, %c0_35] : memref<288x32xf32, #tpu.memory_space<vmem>>, vector<1x32xf32>
    %c137 = arith.constant 137 : index
    %c0_36 = arith.constant 0 : index
    %106 = vector.load %arg1[%c137, %c0_36] : memref<288x32xf32, #tpu.memory_space<vmem>>, vector<1x32xf32>
    %c138 = arith.constant 138 : index
    %c0_37 = arith.constant 0 : index
    %107 = vector.load %arg1[%c138, %c0_37] : memref<288x32xf32, #tpu.memory_space<vmem>>, vector<1x32xf32>
    %c139 = arith.constant 139 : index
    %c0_38 = arith.constant 0 : index
    %108 = vector.load %arg1[%c139, %c0_38] : memref<288x32xf32, #tpu.memory_space<vmem>>, vector<1x32xf32>
    %109 = arith.truncf %18 : vector<16x32xf32> to vector<16x32xbf16>
    %cst_39 = arith.constant dense<0.000000e+00> : vector<16x32xf32>
    %110 = tpu.matmul %99, %109, %cst_39 {dimension_numbers = #tpu.dot_dimension_numbers<[1], [0], [0], [1], [0, 0, 1, 1], [], []>} : vector<16x16xbf16>, vector<16x32xbf16>, vector<16x32xf32> -> vector<16x32xf32>
    %111 = arith.addf %110, %71 : vector<16x32xf32>
    %112 = vector.broadcast %108 : vector<1x32xf32> to vector<16x32xf32>
    %113 = arith.mulf %112, %18 : vector<16x32xf32>
    %114 = arith.addf %111, %113 : vector<16x32xf32>
    %115 = arith.truncf %114 : vector<16x32xf32> to vector<16x32xbf16>
    %cst_40 = arith.constant dense<0.000000e+00> : vector<16x64xf32>
    %116 = tpu.matmul %115, %101, %cst_40 {dimension_numbers = #tpu.dot_dimension_numbers<[1], [0], [0], [1], [0, 0, 1, 1], [], []>} : vector<16x32xbf16>, vector<32x64xbf16>, vector<16x64xf32> -> vector<16x64xf32>
    %117 = vector.broadcast %102 : vector<1x64xf32> to vector<16x64xf32>
    %118 = arith.addf %116, %117 : vector<16x64xf32>
    %cst_41 = arith.constant 0.000000e+00 : f32
    %119 = vector.broadcast %cst_41 : f32 to vector<16x64xf32>
    %120 = arith.maximumf %118, %119 : vector<16x64xf32>
    %121 = arith.truncf %120 : vector<16x64xf32> to vector<16x64xbf16>
    %cst_42 = arith.constant dense<0.000000e+00> : vector<16x32xf32>
    %122 = tpu.matmul %121, %104, %cst_42 {dimension_numbers = #tpu.dot_dimension_numbers<[1], [0], [0], [1], [0, 0, 1, 1], [], []>} : vector<16x64xbf16>, vector<64x32xbf16>, vector<16x32xf32> -> vector<16x32xf32>
    %123 = vector.broadcast %105 : vector<1x32xf32> to vector<16x32xf32>
    %124 = arith.addf %122, %123 : vector<16x32xf32>
    %cst_43 = arith.constant dense<0.000000e+00> : vector<16xf32>
    %125 = vector.multi_reduction <add>, %124, %cst_43 [1] : vector<16x32xf32> to vector<16xf32>
    %126 = vector.shape_cast %125 : vector<16xf32> to vector<16x1xf32>
    %cst_44 = arith.constant 3.200000e+01 : f32
    %127 = vector.broadcast %cst_44 : f32 to vector<16x1xf32>
    %128 = arith.divf %126, %127 : vector<16x1xf32>
    %129 = vector.broadcast %128 : vector<16x1xf32> to vector<16x32xf32>
    %130 = arith.subf %124, %129 : vector<16x32xf32>
    %131 = arith.mulf %130, %130 : vector<16x32xf32>
    %cst_45 = arith.constant dense<0.000000e+00> : vector<16xf32>
    %132 = vector.multi_reduction <add>, %131, %cst_45 [1] : vector<16x32xf32> to vector<16xf32>
    %133 = vector.shape_cast %132 : vector<16xf32> to vector<16x1xf32>
    %cst_46 = arith.constant 3.200000e+01 : f32
    %134 = vector.broadcast %cst_46 : f32 to vector<16x1xf32>
    %135 = arith.divf %133, %134 : vector<16x1xf32>
    %136 = vector.broadcast %128 : vector<16x1xf32> to vector<16x32xf32>
    %137 = arith.subf %124, %136 : vector<16x32xf32>
    %cst_47 = arith.constant 9.99999974E-6 : f32
    %138 = vector.broadcast %cst_47 : f32 to vector<16x1xf32>
    %139 = arith.addf %135, %138 : vector<16x1xf32>
    %140 = math.rsqrt %139 : vector<16x1xf32>
    %141 = vector.broadcast %140 : vector<16x1xf32> to vector<16x32xf32>
    %142 = arith.mulf %137, %141 : vector<16x32xf32>
    %143 = vector.broadcast %106 : vector<1x32xf32> to vector<16x32xf32>
    %144 = arith.mulf %142, %143 : vector<16x32xf32>
    %145 = vector.broadcast %107 : vector<1x32xf32> to vector<16x32xf32>
    %146 = arith.addf %144, %145 : vector<16x32xf32>
    %147 = vector.broadcast %94 : vector<16x1xf32> to vector<16x32xf32>
    %148 = arith.mulf %146, %147 : vector<16x32xf32>
    %cst_48 = arith.constant 0.000000e+00 : f32
    %149 = vector.broadcast %cst_48 : f32 to vector<16x32xf32>
    %150 = arith.maximumf %148, %149 : vector<16x32xf32>
    %151 = arith.addf %150, %18 : vector<16x32xf32>
    %c40 = arith.constant 40 : index
    %c0_49 = arith.constant 0 : index
    %152 = vector.load %arg2[%c40, %c0_49] : memref<120x64xf32, #tpu.memory_space<vmem>>, vector<32x64xf32>
    %153 = arith.truncf %152 : vector<32x64xf32> to vector<32x64xbf16>
    %c72_50 = arith.constant 72 : index
    %c0_51 = arith.constant 0 : index
    %154 = vector.load %arg2[%c72_50, %c0_51] : memref<120x64xf32, #tpu.memory_space<vmem>>, vector<1x64xf32>
    %c144 = arith.constant 144 : index
    %c0_52 = arith.constant 0 : index
    %155 = vector.load %arg1[%c144, %c0_52] : memref<288x32xf32, #tpu.memory_space<vmem>>, vector<64x32xf32>
    %156 = arith.truncf %155 : vector<64x32xf32> to vector<64x32xbf16>
    %c208 = arith.constant 208 : index
    %c0_53 = arith.constant 0 : index
    %157 = vector.load %arg1[%c208, %c0_53] : memref<288x32xf32, #tpu.memory_space<vmem>>, vector<1x32xf32>
    %c209 = arith.constant 209 : index
    %c0_54 = arith.constant 0 : index
    %158 = vector.load %arg1[%c209, %c0_54] : memref<288x32xf32, #tpu.memory_space<vmem>>, vector<1x32xf32>
    %c210 = arith.constant 210 : index
    %c0_55 = arith.constant 0 : index
    %159 = vector.load %arg1[%c210, %c0_55] : memref<288x32xf32, #tpu.memory_space<vmem>>, vector<1x32xf32>
    %c211 = arith.constant 211 : index
    %c0_56 = arith.constant 0 : index
    %160 = vector.load %arg1[%c211, %c0_56] : memref<288x32xf32, #tpu.memory_space<vmem>>, vector<1x32xf32>
    %161 = arith.truncf %151 : vector<16x32xf32> to vector<16x32xbf16>
    %cst_57 = arith.constant dense<0.000000e+00> : vector<16x32xf32>
    %162 = tpu.matmul %99, %161, %cst_57 {dimension_numbers = #tpu.dot_dimension_numbers<[1], [0], [0], [1], [0, 0, 1, 1], [], []>} : vector<16x16xbf16>, vector<16x32xbf16>, vector<16x32xf32> -> vector<16x32xf32>
    %163 = arith.addf %162, %71 : vector<16x32xf32>
    %164 = vector.broadcast %160 : vector<1x32xf32> to vector<16x32xf32>
    %165 = arith.mulf %164, %151 : vector<16x32xf32>
    %166 = arith.addf %163, %165 : vector<16x32xf32>
    %167 = arith.truncf %166 : vector<16x32xf32> to vector<16x32xbf16>
    %cst_58 = arith.constant dense<0.000000e+00> : vector<16x64xf32>
    %168 = tpu.matmul %167, %153, %cst_58 {dimension_numbers = #tpu.dot_dimension_numbers<[1], [0], [0], [1], [0, 0, 1, 1], [], []>} : vector<16x32xbf16>, vector<32x64xbf16>, vector<16x64xf32> -> vector<16x64xf32>
    %169 = vector.broadcast %154 : vector<1x64xf32> to vector<16x64xf32>
    %170 = arith.addf %168, %169 : vector<16x64xf32>
    %cst_59 = arith.constant 0.000000e+00 : f32
    %171 = vector.broadcast %cst_59 : f32 to vector<16x64xf32>
    %172 = arith.maximumf %170, %171 : vector<16x64xf32>
    %173 = arith.truncf %172 : vector<16x64xf32> to vector<16x64xbf16>
    %cst_60 = arith.constant dense<0.000000e+00> : vector<16x32xf32>
    %174 = tpu.matmul %173, %156, %cst_60 {dimension_numbers = #tpu.dot_dimension_numbers<[1], [0], [0], [1], [0, 0, 1, 1], [], []>} : vector<16x64xbf16>, vector<64x32xbf16>, vector<16x32xf32> -> vector<16x32xf32>
    %175 = vector.broadcast %157 : vector<1x32xf32> to vector<16x32xf32>
    %176 = arith.addf %174, %175 : vector<16x32xf32>
    %cst_61 = arith.constant dense<0.000000e+00> : vector<16xf32>
    %177 = vector.multi_reduction <add>, %176, %cst_61 [1] : vector<16x32xf32> to vector<16xf32>
    %178 = vector.shape_cast %177 : vector<16xf32> to vector<16x1xf32>
    %cst_62 = arith.constant 3.200000e+01 : f32
    %179 = vector.broadcast %cst_62 : f32 to vector<16x1xf32>
    %180 = arith.divf %178, %179 : vector<16x1xf32>
    %181 = vector.broadcast %180 : vector<16x1xf32> to vector<16x32xf32>
    %182 = arith.subf %176, %181 : vector<16x32xf32>
    %183 = arith.mulf %182, %182 : vector<16x32xf32>
    %cst_63 = arith.constant dense<0.000000e+00> : vector<16xf32>
    %184 = vector.multi_reduction <add>, %183, %cst_63 [1] : vector<16x32xf32> to vector<16xf32>
    %185 = vector.shape_cast %184 : vector<16xf32> to vector<16x1xf32>
    %cst_64 = arith.constant 3.200000e+01 : f32
    %186 = vector.broadcast %cst_64 : f32 to vector<16x1xf32>
    %187 = arith.divf %185, %186 : vector<16x1xf32>
    %188 = vector.broadcast %180 : vector<16x1xf32> to vector<16x32xf32>
    %189 = arith.subf %176, %188 : vector<16x32xf32>
    %cst_65 = arith.constant 9.99999974E-6 : f32
    %190 = vector.broadcast %cst_65 : f32 to vector<16x1xf32>
    %191 = arith.addf %187, %190 : vector<16x1xf32>
    %192 = math.rsqrt %191 : vector<16x1xf32>
    %193 = vector.broadcast %192 : vector<16x1xf32> to vector<16x32xf32>
    %194 = arith.mulf %189, %193 : vector<16x32xf32>
    %195 = vector.broadcast %158 : vector<1x32xf32> to vector<16x32xf32>
    %196 = arith.mulf %194, %195 : vector<16x32xf32>
    %197 = vector.broadcast %159 : vector<1x32xf32> to vector<16x32xf32>
    %198 = arith.addf %196, %197 : vector<16x32xf32>
    %199 = vector.broadcast %94 : vector<16x1xf32> to vector<16x32xf32>
    %200 = arith.mulf %198, %199 : vector<16x32xf32>
    %cst_66 = arith.constant 0.000000e+00 : f32
    %201 = vector.broadcast %cst_66 : f32 to vector<16x32xf32>
    %202 = arith.maximumf %200, %201 : vector<16x32xf32>
    %203 = arith.addf %202, %151 : vector<16x32xf32>
    %c80 = arith.constant 80 : index
    %c0_67 = arith.constant 0 : index
    %204 = vector.load %arg2[%c80, %c0_67] : memref<120x64xf32, #tpu.memory_space<vmem>>, vector<32x64xf32>
    %205 = arith.truncf %204 : vector<32x64xf32> to vector<32x64xbf16>
    %c112 = arith.constant 112 : index
    %c0_68 = arith.constant 0 : index
    %206 = vector.load %arg2[%c112, %c0_68] : memref<120x64xf32, #tpu.memory_space<vmem>>, vector<1x64xf32>
    %c216 = arith.constant 216 : index
    %c0_69 = arith.constant 0 : index
    %207 = vector.load %arg1[%c216, %c0_69] : memref<288x32xf32, #tpu.memory_space<vmem>>, vector<64x32xf32>
    %208 = arith.truncf %207 : vector<64x32xf32> to vector<64x32xbf16>
    %c280 = arith.constant 280 : index
    %c0_70 = arith.constant 0 : index
    %209 = vector.load %arg1[%c280, %c0_70] : memref<288x32xf32, #tpu.memory_space<vmem>>, vector<1x32xf32>
    %c281 = arith.constant 281 : index
    %c0_71 = arith.constant 0 : index
    %210 = vector.load %arg1[%c281, %c0_71] : memref<288x32xf32, #tpu.memory_space<vmem>>, vector<1x32xf32>
    %c282 = arith.constant 282 : index
    %c0_72 = arith.constant 0 : index
    %211 = vector.load %arg1[%c282, %c0_72] : memref<288x32xf32, #tpu.memory_space<vmem>>, vector<1x32xf32>
    %c283 = arith.constant 283 : index
    %c0_73 = arith.constant 0 : index
    %212 = vector.load %arg1[%c283, %c0_73] : memref<288x32xf32, #tpu.memory_space<vmem>>, vector<1x32xf32>
    %213 = arith.truncf %203 : vector<16x32xf32> to vector<16x32xbf16>
    %cst_74 = arith.constant dense<0.000000e+00> : vector<16x32xf32>
    %214 = tpu.matmul %99, %213, %cst_74 {dimension_numbers = #tpu.dot_dimension_numbers<[1], [0], [0], [1], [0, 0, 1, 1], [], []>} : vector<16x16xbf16>, vector<16x32xbf16>, vector<16x32xf32> -> vector<16x32xf32>
    %215 = arith.addf %214, %71 : vector<16x32xf32>
    %216 = vector.broadcast %212 : vector<1x32xf32> to vector<16x32xf32>
    %217 = arith.mulf %216, %203 : vector<16x32xf32>
    %218 = arith.addf %215, %217 : vector<16x32xf32>
    %219 = arith.truncf %218 : vector<16x32xf32> to vector<16x32xbf16>
    %cst_75 = arith.constant dense<0.000000e+00> : vector<16x64xf32>
    %220 = tpu.matmul %219, %205, %cst_75 {dimension_numbers = #tpu.dot_dimension_numbers<[1], [0], [0], [1], [0, 0, 1, 1], [], []>} : vector<16x32xbf16>, vector<32x64xbf16>, vector<16x64xf32> -> vector<16x64xf32>
    %221 = vector.broadcast %206 : vector<1x64xf32> to vector<16x64xf32>
    %222 = arith.addf %220, %221 : vector<16x64xf32>
    %cst_76 = arith.constant 0.000000e+00 : f32
    %223 = vector.broadcast %cst_76 : f32 to vector<16x64xf32>
    %224 = arith.maximumf %222, %223 : vector<16x64xf32>
    %225 = arith.truncf %224 : vector<16x64xf32> to vector<16x64xbf16>
    %cst_77 = arith.constant dense<0.000000e+00> : vector<16x32xf32>
    %226 = tpu.matmul %225, %208, %cst_77 {dimension_numbers = #tpu.dot_dimension_numbers<[1], [0], [0], [1], [0, 0, 1, 1], [], []>} : vector<16x64xbf16>, vector<64x32xbf16>, vector<16x32xf32> -> vector<16x32xf32>
    %227 = vector.broadcast %209 : vector<1x32xf32> to vector<16x32xf32>
    %228 = arith.addf %226, %227 : vector<16x32xf32>
    %cst_78 = arith.constant dense<0.000000e+00> : vector<16xf32>
    %229 = vector.multi_reduction <add>, %228, %cst_78 [1] : vector<16x32xf32> to vector<16xf32>
    %230 = vector.shape_cast %229 : vector<16xf32> to vector<16x1xf32>
    %cst_79 = arith.constant 3.200000e+01 : f32
    %231 = vector.broadcast %cst_79 : f32 to vector<16x1xf32>
    %232 = arith.divf %230, %231 : vector<16x1xf32>
    %233 = vector.broadcast %232 : vector<16x1xf32> to vector<16x32xf32>
    %234 = arith.subf %228, %233 : vector<16x32xf32>
    %235 = arith.mulf %234, %234 : vector<16x32xf32>
    %cst_80 = arith.constant dense<0.000000e+00> : vector<16xf32>
    %236 = vector.multi_reduction <add>, %235, %cst_80 [1] : vector<16x32xf32> to vector<16xf32>
    %237 = vector.shape_cast %236 : vector<16xf32> to vector<16x1xf32>
    %cst_81 = arith.constant 3.200000e+01 : f32
    %238 = vector.broadcast %cst_81 : f32 to vector<16x1xf32>
    %239 = arith.divf %237, %238 : vector<16x1xf32>
    %240 = vector.broadcast %232 : vector<16x1xf32> to vector<16x32xf32>
    %241 = arith.subf %228, %240 : vector<16x32xf32>
    %cst_82 = arith.constant 9.99999974E-6 : f32
    %242 = vector.broadcast %cst_82 : f32 to vector<16x1xf32>
    %243 = arith.addf %239, %242 : vector<16x1xf32>
    %244 = math.rsqrt %243 : vector<16x1xf32>
    %245 = vector.broadcast %244 : vector<16x1xf32> to vector<16x32xf32>
    %246 = arith.mulf %241, %245 : vector<16x32xf32>
    %247 = vector.broadcast %210 : vector<1x32xf32> to vector<16x32xf32>
    %248 = arith.mulf %246, %247 : vector<16x32xf32>
    %249 = vector.broadcast %211 : vector<1x32xf32> to vector<16x32xf32>
    %250 = arith.addf %248, %249 : vector<16x32xf32>
    %251 = vector.broadcast %94 : vector<16x1xf32> to vector<16x32xf32>
    %252 = arith.mulf %250, %251 : vector<16x32xf32>
    %253 = arith.addf %252, %203 : vector<16x32xf32>
    %cst_83 = arith.constant dense<0.000000e+00> : vector<2x32xf32>
    %254 = tpu.matmul %98, %253, %cst_83 {dimension_numbers = #tpu.dot_dimension_numbers<[1], [0], [0], [1], [0, 0, 1, 1], [], []>} : vector<2x16xf32>, vector<16x32xf32>, vector<2x32xf32> -> vector<2x32xf32>
    %c0_84 = arith.constant 0 : index
    %c0_85 = arith.constant 0 : index
    %255 = vector.load %arg3[%c0_84, %c0_85] : memref<2x32xf32, #tpu.memory_space<vmem>>, vector<2x32xf32>
    tpu.vector_store %arg3[%c0_84, %c0_85], %254 {strides = array<i32>} : memref<2x32xf32, #tpu.memory_space<vmem>>, vector<2x32xf32>,
    return
  }
}

</mosaic_0001>

<bundles_post_ra>
// kernel: ginnet_forward.1
= control target key start
LH: loop header
LB: loop body
LE: loop exit
PB: predicated region body
PF: predicated region fallthrough
CT: control target
= control target key end

     0   :  { %v2013_v2 = vmov 5   ;;  %s2470_s0 = inlined_call_operand.vmem [shape: f32[34,32], index: 0, kind: input, shape index: {}]   ;;  %s2471_s1 = inlined_call_operand.vmem [shape: f32[288,32], index: 1, kind: input, shape index: {}]   ;;  %s2472_s2 = inlined_call_operand.vmem [shape: f32[120,64], index: 2, kind: input, shape index: {}]   ;;  %s2473_s3 = inlined_call_operand.hbm [shape: f32[2,32], index: 3, kind: output, shape index: {}]  }
   0x1   :  { %v224_v0 = vld [vmem:[%s2470_s0 + $0x10] sm:$0xff]  ;;  %v2050_v1 = vld [vmem:[%s2470_s0] sm:$0xff]  ;;  %1954 = vset.pattern.permute.xlu1 %v2013_v2  ;;  %1953 = vset.pattern.permute.xlu0 %v2013_v2 }
   0x2   :  { %504 = vperm.xlu1 %1954, %v224_v0   ;;  %496 = vperm.xlu0 %1953, %v2050_v1  }
   0x3   :  { %8 = vsyncpa [#allocation3], 0  ;;  %v225_v3 = vld [vmem:[%s2470_s0 + $0x18] sm:$0xff]  ;;  %v2059_v4 = vld [vmem:[%s2470_s0 + $0x8] sm:$0xff]  ;;  %vm61_vm0 = vcmask 1043456   ;;  %v2014_v6 = vmov 1   ;;  %v18_v14 = vlaneseq }
   0x4   :  { %v53_v5 = vld [vmem:[%s2471_s1 + $0x10] sm:$0xf]  ;;  %v2015_v7 = vmov 3   ;;  %v2072_v8 = vld [vmem:[%s2471_s1 + $0x8] sm:$0xff]  ;;  %v2016_v9 = vmov 0   ;;  %vm301_vm1 = vcmask 1045504  }
   0x5   :  { %1793 = vmatprep.subr.msk.mxu1 %vm61_vm0, %v53_v5  ;;  %v287_v10 = vld [vmem:[%s2471_s1 + $0x19] sm:$0x3f]  ;;  %v2017_v12 = vmov 2   ;;  %v2018_v13 = vmov 4   ;;  %v2090_v15 = vshrl.u32 %v18_v14, 7  ;;  %v19_v22 = vand.u32 127, %v18_v14 }
   0x6   :  { %508 = vperm.xlu1 %1954, %v225_v3   ;;  %500 = vperm.xlu0 %1953, %v2059_v4   ;;  %v2082_v11 = vld [vmem:[%s2471_s1 + $0x38] sm:$0xff]  ;;  %v493_v16 = vld [vmem:[%s2471_s1 + $0x41] sm:$0x1]  ;;  %v1673_v17 = vld [vmem:[%s2471_s1 + $0x40] ss:$0 sm:$0xff]  ;;  %vm54_vm2 = vcmask 31744  }
   0x7   :  { %1794 = vmatpush3.msk.msra.mxu1 %vm61_vm0, %v53_v5  ;;  %1805 = vmatprep.subr.msk.mxu0 %vm301_vm1, %v287_v10  ;;  %v494_v21 = vsub.f32 0.0, %v493_v16  ;;  %v525_v23 = vsub.s32 0, %v2090_v15  ;;  %v2099_v28 = vcvt.s32.f32 %v19_v22  ;;  %v2019_v38 = vmov 0.0   ;;  %v37_v42 = vld [vmem:[%s2471_s1] sm:$0xff]  ;;  %v258_v47 = vld [vmem:[%s2471_s1 + $0x14] sm:$0x1f] }
   0x8   :  { %1798 = vmatprep.subr.mxu1 %v2072_v8  ;;  %1806 = vmatpush3.msk.msra.mxu0 %vm301_vm1, %v287_v10  ;;  %vm288_vm5 = vcmask 48128   ;;  %vm403_vm6 = vcmask 1044480   ;;  %v541_v52 = vld [vmem:[%s2471_s1 + $0x30] sm:$0xff]  ;;  %vm140_vm9 = vcmask 130048   ;;  %v540_v56 = vld [vmem:[%s2471_s1 + $0x28] sm:$0xff]  ;;  %v539_v60 = vld [vmem:[%s2471_s1 + $0x20] sm:$0xff] }
   0x9   :  { %1821 = vmatprep.subr.mxu0 %v2082_v11  ;;  %v526_v30 = vrot.slane %v494_v21, %v525_v23  ;;  %vm390_vm14 = vcmask 39936   ;;  %vm543_vm0 = vcmask 261120   ;;  %v1683_v10 = vld [vmem:[%s2470_s0 + $0x20] ss:$0 sm:$0xff]  ;;  %v2020_v22 = vmov 1.0  }
   0xa   :  { %1956 = vset.pattern.permute.xlu1 %v2014_v6  ;;  %1955 = vset.pattern.permute.xlu0 %v2014_v6 }
   0xb   :  { %44 = vperm.xlu1 %1956, %v2059_v4   ;;  %40 = vperm.xlu0 %1955, %v2050_v1  }
   0xf   :  { %1957 = vset.pattern.permute.xlu1 %v2015_v7  ;;  %1958 = vset.pattern.permute.xlu0 %v2015_v7 }
  0x10   :  { %260 = vperm.xlu1 %1957, %v2050_v1   ;;  %264 = vperm.xlu0 %1958, %v2059_v4  }
  0x14   :  { %1959 = vset.pattern.permute.xlu1 %v2016_v9  ;;  %268 = vperm.xlu0 %1958, %v224_v0  }
  0x15   :  { %23 = vperm.xlu1 %1959, %v2050_v1  }
  0x18   :  { %1961 = vset.pattern.permute.xlu0 %v2017_v12 }
  0x19   :  { %28 = vperm.xlu1 %1959, %v2059_v4   ;;  %228 = vperm.xlu0 %1961, %v2050_v1  }
  0x1d   :  { %1960 = vset.pattern.permute.xlu1 %v2015_v7  ;;  %243 = vperm.xlu0 %1961, %v225_v3  }
  0x1e   :  { %272 = vperm.xlu1 %1960, %v225_v3  }
  0x21   :  { %1964 = vset.pattern.permute.xlu0 %v2018_v13 }
  0x22   :  { %1962 = vset.pattern.permute.xlu1 %v2017_v12  ;;  %663 = vperm.xlu0 %1964, %v224_v0  }
  0x23   :  { %233 = vperm.xlu1 %1962, %v2059_v4  }
  0x27   :  { %238 = vperm.xlu1 %1962, %v224_v0  }
  0x2b   :  { %1963 = vset.pattern.permute.xlu1 %v2018_v13 }
  0x2c   :  { %667 = vperm.xlu1 %1963, %v225_v3  }
  0x30   :  { %659 = vperm.xlu1 %1963, %v2059_v4  }
  0x34   :  { %655 = vperm.xlu1 %1963, %v2050_v1  }
  0x7d   :  { %v505_v18 = vpop.permute.xlu1 %504  ;;  %v497_v19 = vpop.permute.xlu0 %496 }
  0x7e   :  { %v515_v20 = vsub.f32 %v497_v19, %v1673_v17  ;;  %v517_v29 = vsub.f32 %v505_v18, %v1673_v17 }
  0x80   :  { %v519_v24 = vmul.f32 %v515_v20, %v515_v20  ;;  %v521_v36 = vmul.f32 %v517_v29, %v517_v29  ;;  %v685_v20 = vadd.s32 8, %v2090_v15 }
  0x81   :  { %v509_v25 = vpop.permute.xlu1 %508  ;;  %v501_v26 = vpop.permute.xlu0 %500 }
  0x82   :  { %v516_v27 = vsub.f32 %v501_v26, %v1673_v17  ;;  %v527_v32 = vmul.f32 %v526_v30, %v519_v24  ;;  %v518_v33 = vsub.f32 %v509_v25, %v1673_v17  ;;  %v529_v44 = vmul.f32 %v526_v30, %v521_v36 }
  0x83   :  { %v687_v23 = vcvt.s32.f32 %v685_v20 }
  0x84   :  { %v520_v31 = vmul.f32 %v516_v27, %v516_v27  ;;  %v531_v41 = vmul.f32 1.442695, %v527_v32  ;;  %v522_v43 = vmul.f32 %v518_v33, %v518_v33  ;;  %v535_v53 = vmul.f32 1.442695, %v529_v44 }
  0x86   :  { %v45_v34 = vpop.permute.xlu1 %44  ;;  %v41_v35 = vpop.permute.xlu0 %40  ;;  %v528_v37 = vmul.f32 %v526_v30, %v520_v31  ;;  %1967 = vpow2.f32 %v531_v41  ;;  %v530_v51 = vmul.f32 %v526_v30, %v522_v43 }
  0x87   :  { %vm48_vm3 = vcmp.eq.f32.partialorder %v45_v34, %v2099_v28  ;;  %vm47_vm4 = vcmp.eq.f32.partialorder %v41_v35, %v2099_v28 }
  0x88   :  { %v1649_v39 = vsel %vm48_vm3, 1.0, %v2019_v38  ;;  %v1648_v40 = vsel %vm47_vm4, 1.0, %v2019_v38  ;;  %v533_v48 = vmul.f32 1.442695, %v528_v37  ;;  %v537_v58 = vmul.f32 1.442695, %v530_v51 }
  0x89   :  { %1795 = vmatprep.mubr.msk.f32.mxu1 %vm54_vm2, %v1648_v40 }
  0x8a   :  { %1796 = vmatmul.mubr.msk.f32.vlgmr.msra.gmra.mxu1 %vm54_vm2, %v1649_v39  ;;  %1969 = vpow2.f32 %v533_v48 }
  0x8b   :  { %v261_v45 = vpop.permute.xlu1 %260  ;;  %1799 = vmatpush3.msra.mxu1 %v2072_v8  ;;  %v265_v46 = vpop.permute.xlu0 %264  ;;  %1971 = vpow2.f32 %v535_v53  ;;  %v686_v8 = vcvt.s32.f32 %v2090_v15  ;;  %v1678_v53 = vld [vmem:[%s2471_s1 + $0x1f] ss:$0 sm:$0xff] }
  0x8c   :  { %vm275_vm7 = vcmp.eq.f32.partialorder %v261_v45, %v2099_v28  ;;  %vm276_vm8 = vcmp.eq.f32.partialorder %v265_v46, %v2099_v28  ;;  %1800 = vmatprep.subr.mxu1 %v37_v42  ;;  %1973 = vpow2.f32 %v537_v58 }
  0x8d   :  { %v1659_v49 = vsel %vm275_vm7, 1.0, %v2019_v38  ;;  %v1660_v50 = vsel %vm276_vm8, 1.0, %v2019_v38  ;;  %1801 = vmatpush3.msra.mxu1 %v37_v42  ;;  %vm692_vm3 = vcmp.eq.f32.partialorder %v1683_v10, %v686_v8  ;;  %vm693_vm8 = vcmp.eq.f32.partialorder %v1683_v10, %v687_v23  ;;  %v917_v10 = vld [vmem:[%s2471_s1 + $0x80] sm:$0xff] }
  0x8e   :  { %1807 = vmatprep.mubr.msk.f32.mxu0 %vm288_vm5, %v1659_v49  ;;  %1813 = vmatprep.subr.msk.mxu1 %vm403_vm6, %v258_v47  ;;  %v1684_v18 = vsel %vm692_vm3, 1.0, %v2019_v38  ;;  %v1685_v26 = vsel %vm693_vm8, 1.0, %v2019_v38 }
  0x8f   :  { %1808 = vmatmul.mubr.msk.f32.vlgmr.msra.gmra.mxu0 %vm288_vm5, %v1660_v50  ;;  %v269_v54 = vpop.permute.xlu0 %268 }
  0x90   :  { %v24_v55 = vpop.permute.xlu1 %23  ;;  %vm277_vm10 = vcmp.eq.f32.partialorder %v269_v54, %v2099_v28  ;;  %1822 = vmatpush3.msra.mxu0 %v2082_v11 }
  0x91   :  { %vm31_vm11 = vcmp.eq.f32.partialorder %v24_v55, %v2099_v28  ;;  %v1661_v57 = vsel %vm277_vm10, 1.0, %v2019_v38  ;;  %1823 = vmatprep.subr.mxu0 %v541_v52 }
  0x92   :  { %v1646_v59 = vsel %vm31_vm11, 1.0, %v2019_v38  ;;  %1810 = vmatprep.mubr.msk.f32.mxu0 %vm288_vm5, %v1661_v57  ;;  %1824 = vmatpush3.msra.mxu0 %v541_v52  ;;  %vm2021_vm11 = vmmov 0  }
  0x93   :  { %1802 = vmatprep.mubr.msk.f32.mxu1 %vm140_vm9, %v1646_v59  ;;  %1825 = vmatprep.subr.mxu0 %v540_v56  ;;  %v1968_v3 = vpop.eup %1967 }
  0x94   :  { %v29_v61 = vpop.permute.xlu1 %28  ;;  %1826 = vmatpush3.msra.mxu0 %v540_v56  ;;  %v229_v62 = vpop.permute.xlu0 %228 }
  0x95   :  { %vm32_vm12 = vcmp.eq.f32.partialorder %v29_v61, %v2099_v28  ;;  %vm246_vm13 = vcmp.eq.f32.partialorder %v229_v62, %v2099_v28  ;;  %1827 = vmatprep.subr.mxu0 %v539_v60 }
  0x96   :  { %v1647_v63 = vsel %vm32_vm12, 1.0, %v2019_v38  ;;  %v1655_v0 = vsel %vm246_vm13, 1.0, %v2019_v38  ;;  %1828 = vmatpush3.msra.mxu0 %v539_v60  ;;  %vm1035_vm12 = vcmask 523264   ;;  %vm880_vm13 = vcmask 15360  }
  0x97   :  { %1803 = vmatmul.mubr.msk.f32.vlgmr.msra.gmra.mxu1 %vm140_vm9, %v1647_v63  ;;  %v1970_v6 = vpop.eup %1969 }
  0x98   :  { %1814 = vmatpush3.msk.msra.mxu1 %vm403_vm6, %v258_v47  ;;  %1815 = vmatprep.mubr.msk.f32.mxu1 %vm390_vm14, %v1655_v0  ;;  %v244_v7 = vpop.permute.xlu0 %243  ;;  %v1972_v11 = vpop.eup %1971  ;;  %v905_v0 = vld [vmem:[%s2472_s2 + $0x10] sm:$0xff] }
  0x99   :  { %v273_v2 = vpop.permute.xlu1 %272  ;;  %vm249_vm2 = vcmp.eq.f32.partialorder %v244_v7, %v2099_v28  ;;  %v1974_v14 = vpop.eup %1973 }
  0x9a   :  { %vm278_vm15 = vcmp.eq.f32.partialorder %v273_v2, %v2099_v28  ;;  %v1658_v16 = vsel %vm249_vm2, 1.0, %v2019_v38  ;;  %v906_v2 = vld [vmem:[%s2472_s2 + $0x18] sm:$0xff]  ;;  %vm876_vm2 = vcmask 123904  }
  0x9b   :  { %v1662_v5 = vsel %vm278_vm15, 1.0, %v2019_v38 }
  0x9c   :  { %1811 = vmatmul.mubr.msk.f32.gmra.mxu0 %vm288_vm5, %v1662_v5  ;;  %v903_v5 = vld [vmem:[%s2472_s2] sm:$0xff] }
  0x9d   :  { %1829 = vmatprep.mubr.msk.f32.mxu0 %vm543_vm0, %v1968_v3  ;;  %v664_v19 = vpop.permute.xlu0 %663  ;;  %v908_v3 = vpack.c.bf16 %v906_v2, %v905_v0 }
  0x9e   :  { %v234_v9 = vpop.permute.xlu1 %233  ;;  %vm672_vm6 = vcmp.eq.f32.partialorder %v664_v19, %v2099_v28 }
  0x9f   :  { %vm247_vm1 = vcmp.eq.f32.partialorder %v234_v9, %v2099_v28  ;;  %v916_v9 = vld [vmem:[%s2471_s1 + $0x78] sm:$0xff] }
  0xa0   :  { %v1656_v12 = vsel %vm247_vm1, 1.0, %v2019_v38  ;;  %1830 = vmatmul.mubr.msk.f32.vlgmr.msra.gmra.mxu0 %vm543_vm0, %v1970_v6  ;;  %v904_v6 = vld [vmem:[%s2472_s2 + $0x8] sm:$0xff] }
  0xa1   :  { %1816 = vmatmul.mubr.msk.f32.vlgmr.msra.gmra.mxu1 %vm390_vm14, %v1656_v12  ;;  %1832 = vmatprep.mubr.msk.f32.mxu0 %vm543_vm0, %v1972_v11  ;;  %v907_v7 = vpack.c.bf16 %v904_v6, %v903_v5  ;;  %v921_v11 = vpack.c.bf16 %v917_v10, %v916_v9 }
  0xa2   :  { %v239_v13 = vpop.permute.xlu1 %238 }
  0xa3   :  { %vm248_vm4 = vcmp.eq.f32.partialorder %v239_v13, %v2099_v28 }
  0xa4   :  { %v1657_v17 = vsel %vm248_vm4, 1.0, %v2019_v38  ;;  %1833 = vmatmul.mubr.msk.f32.gmra.mxu0 %vm543_vm0, %v1974_v14 }
  0xa5   :  { %1818 = vmatprep.mubr.msk.f32.mxu1 %vm390_vm14, %v1657_v17  ;;  %1854 = vmatprep.mubr.msk.f32.mxu0 %vm543_vm0, %v1684_v18 }
  0xa6   :  { %1819 = vmatmul.mubr.msk.f32.gmra.mxu1 %vm390_vm14, %v1658_v16  ;;  %v1699_v16 = vld [vmem:[%s2471_s1 + $0x8b] ss:$0 sm:$0xff] }
  0xa7   :  { %v668_v21 = vpop.permute.xlu1 %667  ;;  %1843 = vmatprep.mubr.msk.f32.mxu1 %vm543_vm0, %v1684_v18 }
  0xa8   :  { %vm673_vm5 = vcmp.eq.f32.partialorder %v668_v21, %v2099_v28 }
  0xa9   :  { %1835 = vmatprep.subr.msk.mxu1 %vm673_vm5, %v2020_v22 }
  0xaa   :  { %1836 = vmatpush3.msk.msra.mxu1 %vm673_vm5, %v2020_v22 }
  0xab   :  { %v660_v24 = vpop.permute.xlu1 %659  ;;  %1837 = vmatprep.subr.msk.mxu1 %vm672_vm6, %v2020_v22 }
  0xac   :  { %vm671_vm7 = vcmp.eq.f32.partialorder %v660_v24, %v2099_v28  ;;  %1838 = vmatpush3.msk.msra.mxu1 %vm672_vm6, %v2020_v22 }
  0xad   :  { %1839 = vmatprep.subr.msk.mxu1 %vm671_vm7, %v2020_v22 }
  0xae   :  { %1840 = vmatpush3.msk.msra.mxu1 %vm671_vm7, %v2020_v22 }
  0xaf   :  { %v656_v25 = vpop.permute.xlu1 %655 }
  0xb0   :  { %vm670_vm10 = vcmp.eq.f32.partialorder %v656_v25, %v2099_v28 }
  0xb1   :  { %1841 = vmatprep.subr.msk.mxu1 %vm670_vm10, %v2020_v22 }
  0xb2   :  { %1842 = vmatpush3.msk.msra.mxu1 %vm670_vm10, %v2020_v22 }
  0xb3   :  { %1844 = vmatmul.mubr.msk.f32.vlgmr.msra.gmra.mxu1 %vm543_vm0, %v1685_v26  ;;  %1857 = vmatprep.subr.bf16.mxu1 %v2019_v38 }
  0xb4   :  { %1859 = vmatprep.mubr.msk.bf16.mxu1 %vm2021_vm11, %v2019_v38 }
 0x14a   :  { %v1797_v27 = vpop.f32.mrf.mxu1 }
 0x14c   :  { %v131_v30 = vpop.f32.mrf.mxu1 }
 0x14f   :  { %v1809_v29 = vpop.f32.mrf.mxu0 }
 0x151   :  { %v371_v32 = vpop.f32.mrf.mxu0 }
 0x157   :  { %v1804_v31 = vpop.f32.mrf.mxu1 }
 0x158   :  { %v2177_v34 = vadd.f32 %v1804_v31, %v1797_v27  ;;  %v914_v27 = vld [vmem:[%s2471_s1 + $0x68] sm:$0xff]  ;;  %v912_v31 = vld [vmem:[%s2471_s1 + $0x58] sm:$0xff] }
 0x159   :  { %v213_v33 = vpop.f32.mrf.mxu1 }
 0x15a   :  { %v2179_v35 = vadd.f32 %v213_v33, %v131_v30  ;;  %v976_v22 = vmul.f32 %v1699_v16, %v2177_v34 }
 0x15c   :  { %v926_v36 = vpack.c.bf16 %v2177_v34, %v2179_v35  ;;  %v1812_v37 = vpop.f32.mrf.mxu0  ;;  %v975_v20 = vmul.f32 %v1699_v16, %v2179_v35 }
 0x15e   :  { %v381_v39 = vpop.f32.mrf.mxu0  ;;  %1858 = vmatpush3.bf16.msra.mxu1 %v926_v36  ;;  %v910_v36 = vld [vmem:[%s2471_s1 + $0x48] sm:$0xff] }
 0x15f   :  { %1863 = vmatprep.subr.bf16.mxu1 %v2019_v38 }
 0x160   :  { %v1831_v40 = vpop.f32.mrf.mxu0 }
 0x161   :  { %v1817_v41 = vpop.f32.mrf.mxu1 }
 0x162   :  { %v622_v42 = vpop.f32.mrf.mxu0  ;;  %v479_v46 = vadd.f32 %v1817_v41, %v1809_v29  ;;  %v915_v29 = vld [vmem:[%s2471_s1 + $0x70] sm:$0xff] }
 0x163   :  { %v473_v43 = vpop.f32.mrf.mxu1  ;;  %v920_v30 = vpack.c.bf16 %v915_v29, %v914_v27 }
 0x164   :  { %v1834_v44 = vpop.f32.mrf.mxu0  ;;  %v474_v49 = vadd.f32 %v473_v43, %v371_v32  ;;  %v642_v54 = vadd.f32 %v1831_v40, %v479_v46  ;;  %v913_v32 = vld [vmem:[%s2471_s1 + $0x60] sm:$0xff] }
 0x165   :  { %v919_v33 = vpack.c.bf16 %v913_v32, %v912_v31  ;;  %v1700_v40 = vld [vmem:[%s2472_s2 + $0x20] ss:$0 sm:$0xff] }
 0x166   :  { %v1820_v45 = vpop.f32.mrf.mxu1  ;;  %v632_v52 = vpop.f32.mrf.mxu0  ;;  %v641_v57 = vadd.f32 %v622_v42, %v474_v49  ;;  %v651_v59 = vadd.f32 %v1678_v53, %v642_v54 }
 0x167   :  { %v489_v47 = vadd.f32 %v1820_v45, %v1812_v37  ;;  %v911_v37 = vld [vmem:[%s2471_s1 + $0x50] sm:$0xff] }
 0x168   :  { %v483_v48 = vpop.f32.mrf.mxu1  ;;  %v650_v60 = vadd.f32 %v1678_v53, %v641_v57 }
 0x169   :  { %v644_v50 = vadd.f32 %v1834_v44, %v489_v47  ;;  %v484_v51 = vadd.f32 %v483_v48, %v381_v39  ;;  %v918_v39 = vpack.c.bf16 %v911_v37, %v910_v36 }
 0x16b   :  { %v643_v55 = vadd.f32 %v632_v52, %v484_v51  ;;  %v653_v56 = vadd.f32 %v1678_v53, %v644_v50  ;;  %v2022_v50 = vmov 6   ;;  %v1702_v51 = vld [vmem:[%s2471_s1 + $0x88] ss:$0 sm:$0xff] }
 0x16c   :  { %1966 = vset.pattern.permute.xlu1 %v2022_v50  ;;  %1965 = vset.pattern.permute.xlu0 %v2022_v50 }
 0x16d   :  { %1846 = vmatprep.subr.mxu0 %v653_v56  ;;  %v652_v58 = vadd.f32 %v1678_v53, %v643_v55 }
 0x16e   :  { %1847 = vmatpush3.msra.mxu0 %v653_v56 }
 0x16f   :  { %1848 = vmatprep.subr.mxu0 %v652_v58 }
 0x170   :  { %1849 = vmatpush3.msra.mxu0 %v652_v58 }
 0x171   :  { %1850 = vmatprep.subr.mxu0 %v651_v59 }
 0x172   :  { %1851 = vmatpush3.msra.mxu0 %v651_v59 }
 0x173   :  { %v1845_v61 = vpop.f32.mrf.mxu1  ;;  %1852 = vmatprep.subr.mxu0 %v650_v60 }
 0x174   :  { %1853 = vmatpush3.msra.mxu0 %v650_v60 }
 0x175   :  { %v770_v62 = vpop.f32.mrf.mxu1  ;;  %1855 = vmatmul.mubr.msk.f32.vlgmr.msra.gmra.mxu0 %vm543_vm0, %v1685_v26  ;;  %1871 = vmatprep.subr.bf16.mxu0 %v2019_v38 }
 0x176   :  { %v2189_v63 = vpack.c.bf16 %v1845_v61, %v770_v62  ;;  %1879 = vmatprep.mubr.msk.bf16.mxu0 %vm2021_vm11, %v2019_v38  ;;  %1872 = vmatpush3.bf16.msra.mxu0 %v921_v11 }
 0x177   :  { %1873 = vmatprep.subr.bf16.mxu0 %v2019_v38 }
 0x178   :  { %1860 = vmatmul.mubr.msk.bf16.vlgmr.msra.gmra.mxu1 %vm140_vm9, %v2189_v63 }
 0x179   :  { %1867 = vmatprep.mubr.msk.bf16.mxu1 %vm2021_vm11, %v2019_v38  ;;  %1864 = vmatpush3.bf16.msra.mxu1 %v908_v3 }
 0x17a   :  { %1865 = vmatprep.subr.bf16.mxu1 %v2019_v38  ;;  %1874 = vmatpush3.bf16.msra.mxu0 %v920_v30 }
 0x17b   :  { %1875 = vmatprep.subr.bf16.mxu0 %v2019_v38 }
 0x17d   :  { %1866 = vmatpush3.bf16.msra.mxu1 %v907_v7 }
 0x17e   :  { %1883 = vmatprep.subr.bf16.mxu1 %v2019_v38  ;;  %1876 = vmatpush3.bf16.msra.mxu0 %v919_v33 }
 0x17f   :  { %1877 = vmatprep.subr.bf16.mxu0 %v2019_v38 }
 0x182   :  { %1878 = vmatpush3.bf16.msra.mxu0 %v918_v39 }
 0x183   :  { %1897 = vmatprep.subr.bf16.mxu0 %v2019_v38 }
 0x235   :  { %v2218_v12 = vpop.f32.mrf.mxu0 }
 0x237   :  { %v2220_v13 = vpop.f32.mrf.mxu0 }
 0x238   :  { %v964_v14 = vpop.f32.mrf.mxu1 }
 0x239   :  { %v965_v18 = vadd.f32 %v964_v14, %v2220_v13 }
 0x23a   :  { %v1861_v17 = vpop.f32.mrf.mxu1 }
 0x23b   :  { %v977_v24 = vadd.f32 %v975_v20, %v965_v18 }
 0x23c   :  { %v967_v19 = vpop.f32.mrf.mxu1 }
 0x23d   :  { %v968_v21 = vadd.f32 %v2218_v12, %v967_v19 }
 0x23e   :  { %v1862_v23 = vpop.f32.mrf.mxu1 }
 0x23f   :  { %v978_v25 = vadd.f32 %v976_v22, %v968_v21 }
 0x241   :  { %v979_v26 = vpack.c.bf16 %v978_v25, %v977_v24 }
 0x243   :  { %1868 = vmatmul.mubr.msk.bf16.vlgmr.msra.gmra.mxu1 %vm543_vm0, %v979_v26 }
 0x244   :  { %1885 = vmatprep.mubr.msk.bf16.mxu1 %vm2021_vm11, %v2019_v38 }
 0x303   :  { %v1021_v41 = vpop.f32.mrf.mxu1 }
 0x304   :  { %v1022_v43 = vadd.f32 %v1700_v40, %v1021_v41  ;;  %v1704_v41 = vld [vmem:[%s2471_s1 + $0x89] ss:$0 sm:$0xff] }
 0x305   :  { %v1869_v42 = vpop.f32.mrf.mxu1 }
 0x306   :  { %v1028_v47 = vmax.f32 %v1022_v43, 0.0 }
 0x307   :  { %v1024_v44 = vpop.f32.mrf.mxu1 }
 0x308   :  { %v1025_v45 = vadd.f32 %v1700_v40, %v1024_v44  ;;  %v1705_v44 = vld [vmem:[%s2471_s1 + $0x8a] ss:$0 sm:$0xff] }
 0x309   :  { %v1870_v46 = vpop.f32.mrf.mxu1 }
 0x30a   :  { %v1029_v48 = vmax.f32 %v1025_v45, 0.0 }
 0x30c   :  { %v1030_v49 = vpack.c.bf16 %v1029_v48, %v1028_v47 }
 0x30e   :  { %1880 = vmatmul.mubr.msk.bf16.vlgmr.msra.gmra.mxu0 %vm1035_vm12, %v1030_v49 }
 0x30f   :  { %1905 = vmatprep.mubr.msk.bf16.mxu0 %vm2021_vm11, %v2019_v38 }
 0x3ce   :  { %v1073_v52 = vpop.f32.mrf.mxu0 }
 0x3cf   :  { %v1074_v53 = vadd.f32 %v1702_v51, %v1073_v52 }
 0x3d0   :  { %v1881_v54 = vpop.f32.mrf.mxu0 }
 0x3d1   :  { %v1080_v55 = vsel %vm543_vm0, %v1074_v53, 0.0 }
 0x3d2   :  { %1081 = vadd.xlane.f32.xlu0 %v1080_v55  ;;  %v1076_v56 = vpop.f32.mrf.mxu0 }
 0x3d3   :  { %v1077_v57 = vadd.f32 %v1702_v51, %v1076_v56 }
 0x3d4   :  { %v1882_v58 = vpop.f32.mrf.mxu0 }
 0x3d5   :  { %v1083_v59 = vsel %vm543_vm0, %v1077_v57, 0.0  ;;  %v1125_v58 = vld [vmem:[%s2472_s2 + $0x28] sm:$0xff] }
 0x3d6   :  { %1084 = vadd.xlane.f32.xlu1 %v1083_v59  ;;  %v1126_v59 = vld [vmem:[%s2472_s2 + $0x30] sm:$0xff] }
 0x3e7   :  { %867 = vperm.xlu1 %1966, %v2059_v4  }
 0x3e8   :  { %863 = vperm.xlu0 %1965, %v2050_v1  }
 0x45b   :  { %v1082_v60 = vpop.xlane.xlu0 %1081 }
 0x45c   :  { %v1087_v61 = vmul.f32 0.03125, %v1082_v60  ;;  %v1129_v60 = vpack.c.bf16 %v1126_v59, %v1125_v58 }
 0x45e   :  { %v1089_v62 = vsub.f32 %v1074_v53, %v1087_v61  ;;  %v1138_v61 = vld [vmem:[%s2471_s1 + $0xc0] sm:$0xff] }
 0x45f   :  { %v1085_v0 = vpop.xlane.xlu1 %1084 }
 0x460   :  { %v1088_v2 = vmul.f32 0.03125, %v1085_v0  ;;  %v1091_v3 = vmul.f32 %v1089_v62, %v1089_v62 }
 0x462   :  { %v1090_v5 = vsub.f32 %v1077_v57, %v1088_v2  ;;  %v1093_v6 = vsel %vm543_vm0, %v1091_v3, 0.0  ;;  %v1707_v3 = vld [vmem:[%s2471_s1 + $0xd3] ss:$0 sm:$0xff] }
 0x463   :  { %v864_v7 = vpop.permute.xlu0 %863  ;;  %1094 = vadd.xlane.f32.xlu1 %v1093_v6  ;;  %v868_v9 = vpop.permute.xlu1 %867 }
 0x464   :  { %vm870_vm14 = vcmp.eq.f32.partialorder %v864_v7, %v2099_v28  ;;  %vm871_vm15 = vcmp.eq.f32.partialorder %v868_v9, %v2099_v28  ;;  %v1092_v4 = vmul.f32 %v1090_v5, %v1090_v5 }
 0x465   :  { %v1696_v1 = vsel %vm870_vm14, 1.0, %v2019_v38  ;;  %v1697_v10 = vsel %vm871_vm15, 1.0, %v2019_v38 }
 0x466   :  { %v881_v11 = vsel %vm880_vm13, %v1696_v1, 0.0  ;;  %v882_v14 = vsel %vm880_vm13, %v1697_v10, 0.0  ;;  %v1096_v16 = vsel %vm543_vm0, %v1092_v4, 0.0 }
 0x467   :  { %v883_v17 = vadd.f32 %v882_v14, %v881_v11  ;;  %1097 = vadd.xlane.f32.xlu0 %v1096_v16 }
 0x469   :  { %v884_v18 = vrot.slane %v883_v17, 4 }
 0x46b   :  { %v885_v19 = vadd.f32 %v884_v18, %v883_v17  ;;  %v1136_v17 = vld [vmem:[%s2471_s1 + $0xb0] sm:$0xff]  ;;  %v1137_v18 = vld [vmem:[%s2471_s1 + $0xb8] sm:$0xff] }
 0x46d   :  { %v886_v20 = vrot.slane %v885_v19, 2 }
 0x46f   :  { %v887_v21 = vadd.f32 %v886_v20, %v885_v19  ;;  %v1142_v19 = vpack.c.bf16 %v1137_v18, %v1136_v17  ;;  %v1134_v20 = vld [vmem:[%s2471_s1 + $0xa0] sm:$0xff] }
 0x471   :  { %v888_v22 = vrot.slane %v887_v21, 1 }
 0x473   :  { %v889_v23 = vadd.f32 %v888_v22, %v887_v21  ;;  %v1135_v21 = vld [vmem:[%s2471_s1 + $0xa8] sm:$0xff] }
 0x474   :  { %v1141_v22 = vpack.c.bf16 %v1135_v21, %v1134_v20 }
 0x475   :  { %1975 = vrsqrt.f32 %v889_v23  ;;  %v1132_v23 = vld [vmem:[%s2471_s1 + $0x90] sm:$0xff] }
 0x482   :  { %v1976_v28 = vpop.eup %1975 }
 0x483   :  { %v891_v24 = vmul.f32 %v1976_v28, %v1696_v1  ;;  %v892_v26 = vmul.f32 %v1976_v28, %v1697_v10  ;;  %v1133_v28 = vld [vmem:[%s2471_s1 + $0x98] sm:$0xff] }
 0x485   :  { %v893_v25 = vsel %vm880_vm13, %v891_v24, 0.0  ;;  %v896_v27 = vsel %vm880_vm13, %v892_v26, 0.0  ;;  %v1140_v24 = vpack.c.bf16 %v1133_v28, %v1132_v23 }
 0x486   :  { %894 = vadd.xlane.f32.xlu1 %v893_v25  ;;  %v1708_v25 = vld [vmem:[%s2472_s2 + $0x48] ss:$0 sm:$0xff] }
 0x48a   :  { %897 = vadd.xlane.f32.xlu1 %v896_v27 }
 0x4ec   :  { %v1095_v29 = vpop.xlane.xlu1 %1094 }
 0x4ed   :  { %v1099_v30 = vmul.f32 0.03125, %v1095_v29 }
 0x4ef   :  { %v1101_v32 = vadd.f32 1e-05, %v1099_v30 }
 0x4f0   :  { %v1098_v31 = vpop.xlane.xlu0 %1097 }
 0x4f1   :  { %v1100_v33 = vmul.f32 0.03125, %v1098_v31  ;;  %1977 = vrsqrt.f32 %v1101_v32 }
 0x4f3   :  { %v1102_v36 = vadd.f32 1e-05, %v1100_v33 }
 0x4f5   :  { %1979 = vrsqrt.f32 %v1102_v36 }
 0x4fe   :  { %v1978_v37 = vpop.eup %1977 }
 0x4ff   :  { %v1105_v39 = vmul.f32 %v1978_v37, %v1089_v62  ;;  %v1139_v62 = vld [vmem:[%s2471_s1 + $0xc8] sm:$0xff] }
 0x500   :  { %v1143_v0 = vpack.c.bf16 %v1139_v62, %v1138_v61 }
 0x501   :  { %v1111_v42 = vmul.f32 %v1704_v41, %v1105_v39  ;;  %v1710_v39 = vld [vmem:[%s2471_s1 + $0xd0] ss:$0 sm:$0xff] }
 0x502   :  { %v1980_v40 = vpop.eup %1979  ;;  %1898 = vmatpush3.bf16.msra.mxu0 %v1143_v0 }
 0x503   :  { %v1106_v43 = vmul.f32 %v1980_v40, %v1090_v5  ;;  %v1117_v45 = vadd.f32 %v1705_v44, %v1111_v42  ;;  %1899 = vmatprep.subr.bf16.mxu0 %v2019_v38 }
 0x505   :  { %v1112_v46 = vmul.f32 %v1704_v41, %v1106_v43 }
 0x506   :  { %1900 = vmatpush3.bf16.msra.mxu0 %v1142_v19 }
 0x507   :  { %v1118_v49 = vadd.f32 %v1705_v44, %v1112_v46  ;;  %1901 = vmatprep.subr.bf16.mxu0 %v2019_v38 }
 0x50a   :  { %1902 = vmatpush3.bf16.msra.mxu0 %v1141_v22 }
 0x50b   :  { %1903 = vmatprep.subr.bf16.mxu0 %v2019_v38 }
 0x50e   :  { %1904 = vmatpush3.bf16.msra.mxu0 %v1140_v24  ;;  %v1342_v24 = vld [vmem:[%s2472_s2 + $0x50] sm:$0xff] }
 0x50f   :  { %v2282_v47 = vpop.xlane.xlu1 %894  ;;  %1923 = vmatprep.subr.bf16.mxu0 %v2019_v38 }
 0x510   :  { %v1119_v48 = vmul.f32 %v1117_v45, %v2282_v47 }
 0x512   :  { %v1121_v51 = vmax.f32 %v1119_v48, 0.0 }
 0x513   :  { %v2285_v50 = vpop.xlane.xlu1 %897 }
 0x514   :  { %v1120_v52 = vmul.f32 %v1118_v49, %v2285_v50  ;;  %v2289_v54 = vadd.f32 %v1121_v51, %v2179_v35  ;;  %v1127_v35 = vld [vmem:[%s2472_s2 + $0x38] sm:$0xff] }
 0x516   :  { %v1122_v53 = vmax.f32 %v1120_v52, 0.0  ;;  %v1194_v9 = vmul.f32 %v1707_v3, %v2289_v54 }
 0x518   :  { %v2292_v55 = vadd.f32 %v1122_v53, %v2177_v34  ;;  %v1128_v34 = vld [vmem:[%s2472_s2 + $0x40] sm:$0xff] }
 0x519   :  { %v1130_v57 = vpack.c.bf16 %v1128_v34, %v1127_v35 }
 0x51a   :  { %v1148_v56 = vpack.c.bf16 %v2292_v55, %v2289_v54  ;;  %v1195_v1 = vmul.f32 %v1707_v3, %v2292_v55 }
 0x51c   :  { %1884 = vmatpush3.bf16.msra.mxu1 %v1148_v56 }
 0x51d   :  { %1889 = vmatprep.subr.bf16.mxu1 %v2019_v38 }
 0x51f   :  { %1886 = vmatmul.mubr.msk.bf16.vlgmr.msra.gmra.mxu1 %vm140_vm9, %v2189_v63 }
 0x520   :  { %1893 = vmatprep.mubr.msk.bf16.mxu1 %vm2021_vm11, %v2019_v38  ;;  %1890 = vmatpush3.bf16.msra.mxu1 %v1130_v57 }
 0x521   :  { %1891 = vmatprep.subr.bf16.mxu1 %v2019_v38 }
 0x524   :  { %1892 = vmatpush3.bf16.msra.mxu1 %v1129_v60 }
 0x525   :  { %1909 = vmatprep.subr.bf16.mxu1 %v2019_v38 }
 0x5df   :  { %v1183_v2 = vpop.f32.mrf.mxu1 }
 0x5e0   :  { %v1184_v6 = vadd.f32 %v1183_v2, %v2220_v13 }
 0x5e1   :  { %v1887_v5 = vpop.f32.mrf.mxu1 }
 0x5e2   :  { %v1196_v11 = vadd.f32 %v1194_v9, %v1184_v6  ;;  %v1712_v6 = vld [vmem:[%s2471_s1 + $0xd1] ss:$0 sm:$0xff]  ;;  %v1713_v9 = vld [vmem:[%s2471_s1 + $0xd2] ss:$0 sm:$0xff] }
 0x5e3   :  { %v1186_v7 = vpop.f32.mrf.mxu1 }
 0x5e4   :  { %v1187_v4 = vadd.f32 %v2218_v12, %v1186_v7 }
 0x5e5   :  { %v1888_v10 = vpop.f32.mrf.mxu1 }
 0x5e6   :  { %v1197_v14 = vadd.f32 %v1195_v1, %v1187_v4 }
 0x5e8   :  { %v1198_v16 = vpack.c.bf16 %v1197_v14, %v1196_v11 }
 0x5ea   :  { %1894 = vmatmul.mubr.msk.bf16.vlgmr.msra.gmra.mxu1 %vm543_vm0, %v1198_v16 }
 0x5eb   :  { %1911 = vmatprep.mubr.msk.bf16.mxu1 %vm2021_vm11, %v2019_v38 }
 0x6aa   :  { %v1240_v26 = vpop.f32.mrf.mxu1 }
 0x6ab   :  { %v1241_v29 = vadd.f32 %v1708_v25, %v1240_v26  ;;  %v1355_v26 = vld [vmem:[%s2471_s1 + $0x108] sm:$0xff] }
 0x6ac   :  { %v1895_v27 = vpop.f32.mrf.mxu1 }
 0x6ad   :  { %v1247_v33 = vmax.f32 %v1241_v29, 0.0  ;;  %v1356_v27 = vld [vmem:[%s2471_s1 + $0x110] sm:$0xff] }
 0x6ae   :  { %v1243_v30 = vpop.f32.mrf.mxu1  ;;  %v1360_v29 = vpack.c.bf16 %v1356_v27, %v1355_v26 }
 0x6af   :  { %v1244_v31 = vadd.f32 %v1708_v25, %v1243_v30 }
 0x6b0   :  { %v1896_v32 = vpop.f32.mrf.mxu1 }
 0x6b1   :  { %v1248_v36 = vmax.f32 %v1244_v31, 0.0  ;;  %v1715_v31 = vld [vmem:[%s2471_s1 + $0x11b] ss:$0 sm:$0xff] }
 0x6b3   :  { %v1249_v37 = vpack.c.bf16 %v1248_v36, %v1247_v33 }
 0x6b5   :  { %1906 = vmatmul.mubr.msk.bf16.vlgmr.msra.gmra.mxu0 %vm1035_vm12, %v1249_v37 }
 0x6b6   :  { %1931 = vmatprep.mubr.msk.bf16.mxu0 %vm2021_vm11, %v2019_v38  ;;  %1924 = vmatpush3.bf16.msra.mxu0 %v1360_v29 }
 0x6b7   :  { %1925 = vmatprep.subr.bf16.mxu0 %v2019_v38 }
 0x775   :  { %v1291_v40 = vpop.f32.mrf.mxu0 }
 0x776   :  { %v1292_v41 = vadd.f32 %v1710_v39, %v1291_v40 }
 0x777   :  { %v1907_v42 = vpop.f32.mrf.mxu0 }
 0x778   :  { %v1298_v43 = vsel %vm543_vm0, %v1292_v41, 0.0 }
 0x779   :  { %1299 = vadd.xlane.f32.xlu1 %v1298_v43  ;;  %v1294_v44 = vpop.f32.mrf.mxu0 }
 0x77a   :  { %v1295_v45 = vadd.f32 %v1710_v39, %v1294_v44 }
 0x77b   :  { %v1908_v46 = vpop.f32.mrf.mxu0 }
 0x77c   :  { %v1301_v48 = vsel %vm543_vm0, %v1295_v45, 0.0  ;;  %v1351_v46 = vld [vmem:[%s2471_s1 + $0xe8] sm:$0xff] }
 0x77d   :  { %1302 = vadd.xlane.f32.xlu1 %v1301_v48  ;;  %v1352_v48 = vld [vmem:[%s2471_s1 + $0xf0] sm:$0xff] }
 0x802   :  { %v1300_v49 = vpop.xlane.xlu1 %1299 }
 0x803   :  { %v1304_v51 = vmul.f32 0.03125, %v1300_v49  ;;  %v1358_v49 = vpack.c.bf16 %v1352_v48, %v1351_v46 }
 0x805   :  { %v1306_v52 = vsub.f32 %v1292_v41, %v1304_v51  ;;  %v1349_v51 = vld [vmem:[%s2471_s1 + $0xd8] sm:$0xff] }
 0x806   :  { %v1303_v53 = vpop.xlane.xlu1 %1302 }
 0x807   :  { %v1305_v56 = vmul.f32 0.03125, %v1303_v53  ;;  %v1308_v35 = vmul.f32 %v1306_v52, %v1306_v52 }
 0x809   :  { %v1307_v34 = vsub.f32 %v1295_v45, %v1305_v56  ;;  %v1310_v57 = vsel %vm543_vm0, %v1308_v35, 0.0  ;;  %v1354_v45 = vld [vmem:[%s2471_s1 + $0x100] sm:$0xff]  ;;  %v1716_v56 = vld [vmem:[%s2472_s2 + $0x70] ss:$0 sm:$0xff] }
 0x80a   :  { %1311 = vadd.xlane.f32.xlu1 %v1310_v57 }
 0x80b   :  { %v1309_v58 = vmul.f32 %v1307_v34, %v1307_v34 }
 0x80d   :  { %v1313_v59 = vsel %vm543_vm0, %v1309_v58, 0.0 }
 0x80e   :  { %1314 = vadd.xlane.f32.xlu0 %v1313_v59 }
 0x893   :  { %v1312_v60 = vpop.xlane.xlu1 %1311 }
 0x894   :  { %v1316_v61 = vmul.f32 0.03125, %v1312_v60 }
 0x896   :  { %v1318_v62 = vadd.f32 1e-05, %v1316_v61 }
 0x897   :  { %v1315_v0 = vpop.xlane.xlu0 %1314 }
 0x898   :  { %1981 = vrsqrt.f32 %v1318_v62  ;;  %v1317_v2 = vmul.f32 0.03125, %v1315_v0 }
 0x89a   :  { %v1319_v3 = vadd.f32 1e-05, %v1317_v2  ;;  %v1718_v2 = vld [vmem:[%s2471_s1 + $0x118] ss:$0 sm:$0xff] }
 0x89c   :  { %1983 = vrsqrt.f32 %v1319_v3 }
 0x8a5   :  { %v1982_v5 = vpop.eup %1981 }
 0x8a6   :  { %v1322_v7 = vmul.f32 %v1982_v5, %v1306_v52  ;;  %v1350_v52 = vld [vmem:[%s2471_s1 + $0xe0] sm:$0xff] }
 0x8a7   :  { %v1357_v53 = vpack.c.bf16 %v1350_v52, %v1349_v51 }
 0x8a8   :  { %v1328_v4 = vmul.f32 %v1712_v6, %v1322_v7 }
 0x8a9   :  { %v1984_v1 = vpop.eup %1983 }
 0x8aa   :  { %v1323_v10 = vmul.f32 %v1984_v1, %v1307_v34  ;;  %v1334_v11 = vadd.f32 %v1713_v9, %v1328_v4 }
 0x8ac   :  { %v1329_v14 = vmul.f32 %v1712_v6, %v1323_v10  ;;  %v1336_v16 = vmul.f32 %v1334_v11, %v2282_v47 }
 0x8ae   :  { %v1335_v17 = vadd.f32 %v1713_v9, %v1329_v14  ;;  %v1338_v19 = vmax.f32 %v1336_v16, 0.0 }
 0x8b0   :  { %v1337_v18 = vmul.f32 %v1335_v17, %v2285_v50  ;;  %v2375_v21 = vadd.f32 %v1338_v19, %v2289_v54  ;;  %v1344_v54 = vld [vmem:[%s2472_s2 + $0x60] sm:$0xff] }
 0x8b2   :  { %v1339_v20 = vmax.f32 %v1337_v18, 0.0  ;;  %v1411_v37 = vmul.f32 %v1715_v31, %v2375_v21  ;;  %v1694_v18 = vld [vmem:[%s2470_s0 + $0x21] ss:$0 sm:$0xff] }
 0x8b3   :  { %vm859_vm1 = vcmp.eq.f32.partialorder %v1694_v18, %v686_v8 }
 0x8b4   :  { %v2378_v22 = vadd.f32 %v1339_v20, %v2292_v55  ;;  %v1345_v55 = vld [vmem:[%s2472_s2 + $0x68] sm:$0xff] }
 0x8b5   :  { %v1347_v28 = vpack.c.bf16 %v1345_v55, %v1344_v54 }
 0x8b6   :  { %v1365_v23 = vpack.c.bf16 %v2378_v22, %v2375_v21  ;;  %v1412_v40 = vmul.f32 %v1715_v31, %v2378_v22 }
 0x8b8   :  { %1910 = vmatpush3.bf16.msra.mxu1 %v1365_v23 }
 0x8b9   :  { %1915 = vmatprep.subr.bf16.mxu1 %v2019_v38 }
 0x8bb   :  { %1912 = vmatmul.mubr.msk.bf16.vlgmr.msra.gmra.mxu1 %vm140_vm9, %v2189_v63  ;;  %v1343_v63 = vld [vmem:[%s2472_s2 + $0x58] sm:$0xff] }
 0x8bc   :  { %1919 = vmatprep.mubr.msk.bf16.mxu1 %vm2021_vm11, %v2019_v38  ;;  %1916 = vmatpush3.bf16.msra.mxu1 %v1347_v28  ;;  %v1346_v25 = vpack.c.bf16 %v1343_v63, %v1342_v24  ;;  %v1695_v28 = vsel %vm859_vm1, 1.0, %v2019_v38 }
 0x8bd   :  { %1917 = vmatprep.subr.bf16.mxu1 %v2019_v38  ;;  %v877_v63 = vsel %vm876_vm2, %v1695_v28, 0.0 }
 0x8c0   :  { %1918 = vmatpush3.bf16.msra.mxu1 %v1346_v25 }
 0x8c1   :  { %1935 = vmatprep.subr.mxu1 %v2019_v38 }
 0x97b   :  { %v1400_v30 = vpop.f32.mrf.mxu1 }
 0x97c   :  { %v1401_v33 = vadd.f32 %v1400_v30, %v2220_v13  ;;  %v1353_v13 = vld [vmem:[%s2471_s1 + $0xf8] sm:$0xff] }
 0x97d   :  { %v1913_v32 = vpop.f32.mrf.mxu1 }
 0x97e   :  { %v1413_v42 = vadd.f32 %v1411_v37, %v1401_v33  ;;  %v1720_v32 = vld [vmem:[%s2471_s1 + $0x119] ss:$0 sm:$0xff] }
 0x97f   :  { %v1403_v36 = vpop.f32.mrf.mxu1 }
 0x980   :  { %v1404_v39 = vadd.f32 %v2218_v12, %v1403_v36  ;;  %v1359_v12 = vpack.c.bf16 %v1354_v45, %v1353_v13 }
 0x981   :  { %v1914_v41 = vpop.f32.mrf.mxu1 }
 0x982   :  { %v1414_v43 = vadd.f32 %v1412_v40, %v1404_v39  ;;  %1926 = vmatpush3.bf16.msra.mxu0 %v1359_v12  ;;  %v1721_v39 = vld [vmem:[%s2471_s1 + $0x11a] ss:$0 sm:$0xff]  ;;  %s2023_s1 = smov [#allocation2]  }
 0x983   :  { %1927 = vmatprep.subr.bf16.mxu0 %v2019_v38  ;;  %s1638_s13 = sshll.u32 %s2023_s1, 4  ;;  %s1639_s13 = int_to_ptr.vmem [resolvable:$true] %s1638_s13 }
 0x984   :  { %v1415_v44 = vpack.c.bf16 %v1414_v43, %v1413_v42  ;;  %s1991_s14 = scalar_lea.vmem %s1639_s13, 32  ;;  %p1996_p1 = scmp.lt.s32.totalorder %s1639_s13, %s1639_s13 }
 0x985   :  { %p1992_p0 = scmp.ne.s32.totalorder %s1639_s13, %s1991_s14  ;;  %p1997_p2 = scmp.lt.s32.totalorder %s1991_s14, %s1991_s14 }
 0x986   :  { %1920 = vmatmul.mubr.msk.bf16.vlgmr.msra.gmra.mxu1 %vm543_vm0, %v1415_v44  ;;  %1928 = vmatpush3.bf16.msra.mxu0 %v1358_v49 }
 0x987   :  { %1939 = vmatprep.mubr.msk.f32.mxu1 %vm2021_vm11, %v2019_v38  ;;  %1929 = vmatprep.subr.bf16.mxu0 %v2019_v38  ;;  %p1998_p3 = por %p1997_p2, %p1996_p1 }
 0x989   :  { %p1999_p4 = pnand %p1998_p3, %p1992_p0 }
 0x98a   :  { %1930 = vmatpush3.bf16.msra.mxu0 %v1357_v53 }
 0xa46   :  { %v1457_v35 = vpop.f32.mrf.mxu1 }
 0xa47   :  { %v1458_v57 = vadd.f32 %v1716_v56, %v1457_v35 }
 0xa48   :  { %v1921_v34 = vpop.f32.mrf.mxu1 }
 0xa49   :  { %v1464_v61 = vmax.f32 %v1458_v57, 0.0 }
 0xa4a   :  { %v1460_v58 = vpop.f32.mrf.mxu1 }
 0xa4b   :  { %v1461_v59 = vadd.f32 %v1716_v56, %v1460_v58 }
 0xa4c   :  { %v1922_v60 = vpop.f32.mrf.mxu1 }
 0xa4d   :  { %v1465_v62 = vmax.f32 %v1461_v59, 0.0 }
 0xa4f   :  { %v1466_v0 = vpack.c.bf16 %v1465_v62, %v1464_v61 }
 0xa51   :  { %1932 = vmatmul.mubr.msk.bf16.vlgmr.msra.gmra.mxu0 %vm1035_vm12, %v1466_v0 }
 0xb11   :  { %v1508_v3 = vpop.f32.mrf.mxu0 }
 0xb12   :  { %v1509_v5 = vadd.f32 %v1718_v2, %v1508_v3 }
 0xb13   :  { %v1933_v6 = vpop.f32.mrf.mxu0 }
 0xb14   :  { %v1515_v7 = vsel %vm543_vm0, %v1509_v5, 0.0 }
 0xb15   :  { %1516 = vadd.xlane.f32.xlu0 %v1515_v7  ;;  %v1511_v9 = vpop.f32.mrf.mxu0 }
 0xb16   :  { %v1512_v4 = vadd.f32 %v1718_v2, %v1511_v9 }
 0xb17   :  { %v1934_v1 = vpop.f32.mrf.mxu0 }
 0xb18   :  { %v1518_v10 = vsel %vm543_vm0, %v1512_v4, 0.0 }
 0xb19   :  { %1519 = vadd.xlane.f32.xlu1 %v1518_v10 }
 0xb9e   :  { %v1517_v11 = vpop.xlane.xlu0 %1516 }
 0xb9f   :  { %v1521_v14 = vmul.f32 0.03125, %v1517_v11 }
 0xba1   :  { %v1523_v16 = vsub.f32 %v1509_v5, %v1521_v14 }
 0xba2   :  { %v1520_v17 = vpop.xlane.xlu1 %1519 }
 0xba3   :  { %v1522_v19 = vmul.f32 0.03125, %v1520_v17  ;;  %v1525_v20 = vmul.f32 %v1523_v16, %v1523_v16 }
 0xba5   :  { %v1524_v23 = vsub.f32 %v1512_v4, %v1522_v19  ;;  %v1527_v54 = vsel %vm543_vm0, %v1525_v20, 0.0 }
 0xba6   :  { %1528 = vadd.xlane.f32.xlu0 %v1527_v54 }
 0xba7   :  { %v1526_v55 = vmul.f32 %v1524_v23, %v1524_v23 }
 0xba9   :  { %v1530_v24 = vsel %vm543_vm0, %v1526_v55, 0.0  ;;  %vm1630_vm0 = vcmask 254976  }
 0xbaa   :  { %1531 = vadd.xlane.f32.xlu1 %v1530_v24 }
 0xbae   :  { %878 = vadd.xlane.f32.xlu1 %v877_v63 }
 0xc2f   :  { %v1529_v25 = vpop.xlane.xlu0 %1528 }
 0xc30   :  { %v1533_v26 = vmul.f32 0.03125, %v1529_v25 }
 0xc32   :  { %v1535_v27 = vadd.f32 1e-05, %v1533_v26 }
 0xc33   :  { %v1532_v29 = vpop.xlane.xlu1 %1531 }
 0xc34   :  { %1985 = vrsqrt.f32 %v1535_v27  ;;  %v1534_v30 = vmul.f32 0.03125, %v1532_v29 }
 0xc36   :  { %v1536_v31 = vadd.f32 1e-05, %v1534_v30 }
 0xc37   :  { %v879_v15 = vpop.xlane.xlu1 %878 }
 0xc38   :  { %1987 = vrsqrt.f32 %v1536_v31 }
 0xc39   :  { %1989 = vrcp.f32 %v879_v15 }
 0xc41   :  { %v1986_v8 = vpop.eup %1985 }
 0xc42   :  { %v1539_v33 = vmul.f32 %v1986_v8, %v1523_v16 }
 0xc44   :  { %v1545_v36 = vmul.f32 %v1720_v32, %v1539_v33 }
 0xc45   :  { %v1988_v37 = vpop.eup %1987 }
 0xc46   :  { %v1540_v40 = vmul.f32 %v1988_v37, %v1524_v23  ;;  %v1551_v42 = vadd.f32 %v1721_v39, %v1545_v36  ;;  %v1990_v44 = vpop.eup %1989 }
 0xc47   :  { %v901_v46 = vmul.f32 %v1990_v44, %v1695_v28 }
 0xc48   :  { %v1546_v41 = vmul.f32 %v1720_v32, %v1540_v40  ;;  %v1553_v45 = vmul.f32 %v1551_v42, %v2282_v47 }
 0xc4a   :  { %v1552_v43 = vadd.f32 %v1721_v39, %v1546_v41  ;;  %v1555_v48 = vadd.f32 %v1553_v45, %v2375_v21 }
 0xc4c   :  { %v1554_v13 = vmul.f32 %v1552_v43, %v2285_v50 }
 0xc4e   :  { %v1556_v12 = vadd.f32 %v1554_v13, %v2378_v22 }
 0xc50   :  { %1936 = vmatpush3.msra.mxu1 %v1556_v12 }
 0xc51   :  { %1937 = vmatprep.subr.mxu1 %v2019_v38 }
 0xc52   :  { %1938 = vmatpush3.msra.mxu1 %v1555_v48 }
 0xc53   :  { %1940 = vmatmul.mubr.msk.f32.vlgmr.msra.gmra.mxu1 %vm140_vm9, %v901_v46 }
 0xd13   :  { %v1626_v49 = vpop.f32.mrf.mxu1 }
 0xd14   :  { %1631 = vst.msk [vmem:[#allocation2] sm:$0x3] %vm1630_vm0, %v1626_v49 }
 0xd15   :  { %v1941_v50 = vpop.f32.mrf.mxu1 }
 0xd16   :  { %2002 = shalt.err (!%p1999_p4)
}
 0xd17   :  { %1641 = dma.vmem_to_hbm [thread:$0]  %s1639_s13, 32, %s2473_s3, [#allocation3]  }
 0xd18   :  { %2011 = dma.done.wait [#allocation3], 32  }
 0xd19   :  { %2012 = vsyncadd [#allocation3], 4294967264 }
 0xd1a   :  { %1645 = vsyncpa [#allocation3], 1 }

</bundles_post_ra>
